<compile_context>
chip_gen: v7x
topology: tpu7x:2x2x1
jax: 0.10.0
libtpu: 0.0.40
codegen_flags: <defaults>
</compile_context>

<pallas_src>
import functools
import math

import jax
import jax.numpy as jnp
from jax import lax
from jax.experimental import pallas as pl
from jax.experimental.pallas import tpu as pltpu


# --------------------------------------------------------------------------
# Pallas tiled matmul with fused bias epilogue (conv hot path)
# --------------------------------------------------------------------------
def _matmul_bias_kernel(a_ref, b_ref, bias_ref, o_ref):
    k = pl.program_id(2)

    @pl.when(k == 0)
    def _init():
        o_ref[...] = jnp.zeros_like(o_ref)

    o_ref[...] += jnp.dot(a_ref[...], b_ref[...],
                          preferred_element_type=jnp.float32)

    @pl.when(k == pl.num_programs(2) - 1)
    def _epilogue():
        o_ref[...] += bias_ref[...]          # (1, tn) broadcast over rows


def _round_up(x, m):
    return ((x + m - 1) // m) * m


def _pick_m_tile(m, cap=256):
    # Never pad small M (full-dim block is always legal); otherwise 128/256 tiles.
    if m <= cap:
        return m, m
    if m % 256 == 0:
        return 256, m
    if m % 128 == 0:
        return 128, m
    return 128, _round_up(m, 128)


def _pick_lane_tile(d, cap):
    dp = _round_up(d, 128)
    if dp <= cap:
        return dp, dp
    if dp % cap == 0:
        return cap, dp
    if dp % 256 == 0:
        return 256, dp
    return 128, dp


def pallas_matmul_bias(a, b, bias):
    """(M,K) @ (K,N) + bias -> (M,N) in f32. bf16 MXU operands, f32 accumulate."""
    M, K = a.shape
    K2, N = b.shape
    assert K == K2
    tm, Mp = _pick_m_tile(M)
    tk, Kp = _pick_lane_tile(K, 512)
    tn, Np = _pick_lane_tile(N, 256)

    a_p = a.astype(jnp.bfloat16)
    if (Mp, Kp) != (M, K):
        a_p = jnp.pad(a_p, ((0, Mp - M), (0, Kp - K)))
    b_p = b.astype(jnp.bfloat16)
    if (Kp, Np) != (K, N):
        b_p = jnp.pad(b_p, ((0, Kp - K), (0, Np - N)))
    bias_p = bias.reshape(1, N).astype(jnp.float32)
    if Np != N:
        bias_p = jnp.pad(bias_p, ((0, 0), (0, Np - N)))

    out = pl.pallas_call(
        _matmul_bias_kernel,
        out_shape=jax.ShapeDtypeStruct((Mp, Np), jnp.float32),
        grid_spec=pltpu.PrefetchScalarGridSpec(
            num_scalar_prefetch=0,
            grid=(Mp // tm, Np // tn, Kp // tk),
            in_specs=[pl.BlockSpec((tm, tk), lambda i, j, k: (i, k)),
                      pl.BlockSpec((tk, tn), lambda i, j, k: (k, j)),
                      pl.BlockSpec((1, tn), lambda i, j, k: (0, j))],
            out_specs=pl.BlockSpec((tm, tn), lambda i, j, k: (i, j))),
        compiler_params=pltpu.CompilerParams(
            dimension_semantics=("parallel", "parallel", "arbitrary")),
    )(a_p, b_p, bias_p)
    if (Mp, Np) != (M, N):
        out = out[:M, :N]
    return out


# --------------------------------------------------------------------------
# Fused GroupNorm + Mish Pallas kernel (one HBM read + one write per sample)
# --------------------------------------------------------------------------
def _groupnorm_mish_kernel(x_ref, gmat_ref, gamma_ref, beta_ref, o_ref, *, eps):
    x = x_ref[0]                                  # (HW, C) f32
    g = gmat_ref[...]                             # (C, C): 1/(cg*HW) within group
    # Per-channel group mean / E[x^2] via a tiny group-mask matmul + row reduce.
    mean = jnp.sum(jnp.dot(x, g, preferred_element_type=jnp.float32),
                   axis=0, keepdims=True)         # (1, C)
    ex2 = jnp.sum(jnp.dot(x * x, g, preferred_element_type=jnp.float32),
                  axis=0, keepdims=True)          # (1, C)
    var = ex2 - mean * mean                       # biased variance (GroupNorm)
    rstd = lax.rsqrt(var + eps)
    scale = gamma_ref[...] * rstd                 # (1, C)
    shift = beta_ref[...] - mean * scale          # (1, C)
    y = x * scale + shift
    # Mish: y * tanh(softplus(y)), numerically stable softplus.
    sp = jnp.maximum(y, 0.0) + jnp.log(1.0 + jnp.exp(-jnp.abs(y)))
    o_ref[0] = y * jnp.tanh(sp)


def groupnorm_mish(x_nhwc, gamma, beta, groups, eps=1e-5):
    N, H, W, C = x_nhwc.shape
    assert C % groups == 0
    HW = H * W
    cg = C // groups
    x3 = x_nhwc.reshape(N, HW, C).astype(jnp.float32)
    gid = jnp.arange(C, dtype=jnp.int32) // cg
    gmat = (gid[:, None] == gid[None, :]).astype(jnp.float32) / float(cg * HW)
    gamma2 = gamma.reshape(1, C).astype(jnp.float32)
    beta2 = beta.reshape(1, C).astype(jnp.float32)
    # One grid step per sample; each block is far under VMEM for Block-sized
    # feature maps.  TODO(synk): for very large H*W*C, split HW into row tiles
    # with a two-pass (stats, then apply) pipeline.
    out = pl.pallas_call(
        functools.partial(_groupnorm_mish_kernel, eps=eps),
        out_shape=jax.ShapeDtypeStruct((N, HW, C), jnp.float32),
        grid_spec=pltpu.PrefetchScalarGridSpec(
            num_scalar_prefetch=0,
            grid=(N,),
            in_specs=[pl.BlockSpec((1, HW, C), lambda n: (n, 0, 0)),
                      pl.BlockSpec((C, C), lambda n: (0, 0)),
                      pl.BlockSpec((1, C), lambda n: (0, 0)),
                      pl.BlockSpec((1, C), lambda n: (0, 0))],
            out_specs=pl.BlockSpec((1, HW, C), lambda n: (n, 0, 0))),
        compiler_params=pltpu.CompilerParams(
            dimension_semantics=("parallel",)),
    )(x3, gmat, gamma2, beta2)
    return out.reshape(N, H, W, C)


# --------------------------------------------------------------------------
# Conv2d(3x3, padding=1, stride=1) via im2col + Pallas matmul
# --------------------------------------------------------------------------
def conv2d_same3x3(x, w, b):
    """x: (N,H,W,Cin) NHWC; w: (3,3,Cin,Cout) HWIO; bias b: (Cout,)."""
    N, H, W, Cin = x.shape
    KH, KW, _, Cout = w.shape
    xp = jnp.pad(x, ((0, 0), (1, 1), (1, 1), (0, 0)))
    # TODO(synk): patches are still materialized in HBM; for large feature maps
    # fold the (kh, kw) taps into the matmul reduction grid instead.
    cols = [xp[:, i:i + H, j:j + W, :] for i in range(KH) for j in range(KW)]
    patches = jnp.concatenate(cols, axis=-1)            # (N, H, W, KH*KW*Cin)
    a = patches.reshape(N * H * W, KH * KW * Cin)
    bm = w.reshape(KH * KW * Cin, Cout)
    out = pallas_matmul_bias(a, bm, b)                  # (N*H*W, Cout) f32
    return out.reshape(N, H, W, Cout)


# --------------------------------------------------------------------------
# Block parameters + forward (matches the PyTorch Block.forward semantics)
# --------------------------------------------------------------------------
def init_block_params(key, dim, dim_out):
    k1, k2 = jax.random.split(key)
    fan_in = 3 * 3 * dim
    bound = 1.0 / math.sqrt(fan_in)
    return {
        'conv_w': jax.random.uniform(k1, (3, 3, dim, dim_out), jnp.float32,
                                     -bound, bound),
        'conv_b': jax.random.uniform(k2, (dim_out,), jnp.float32, -bound, bound),
        'gn_w': jnp.ones((dim_out,), jnp.float32),      # GroupNorm affine init
        'gn_b': jnp.zeros((dim_out,), jnp.float32),
    }


def block_forward(params, x_nchw, groups=8):
    x = jnp.transpose(x_nchw.astype(jnp.float32), (0, 2, 3, 1))  # NCHW -> NHWC
    y = conv2d_same3x3(x, params['conv_w'], params['conv_b'])
    y = groupnorm_mish(y, params['gn_w'], params['gn_b'], groups=groups)
    return jnp.transpose(y, (0, 3, 1, 2))                        # NHWC -> NCHW


if __name__ == "__main__":
    key = jax.random.PRNGKey(0)
    xkey, pkey = jax.random.split(key)
    dim, dim_out, groups = 4, 32, 8
    x = jax.random.normal(xkey, (2, dim, 16, 16), jnp.float32)   # NCHW input
    params = init_block_params(pkey, dim, dim_out)

    fwd = jax.jit(lambda inp: block_forward(params, inp, groups=groups))
    out = jax.block_until_ready(fwd(x))
    assert out.shape == (2, dim_out, 16, 16) and out.dtype == jnp.float32
    assert bool(jnp.all(jnp.isfinite(out)))
    print("KERNEL_OK")
</pallas_src>

<mosaic_0001>
module attributes {stable_mosaic.version = 11 : i64} {
  func.func @_matmul_bias_kernel(%arg0: i32, %arg1: i32, %arg2: i32, %arg3: memref<256x128xbf16, #tpu.memory_space<vmem>>, %arg4: memref<128x128xbf16, #tpu.memory_space<vmem>>, %arg5: memref<1x128xf32, #tpu.memory_space<vmem>>, %arg6: memref<256x128xf32, #tpu.memory_space<vmem>>) attributes {dimension_semantics = [#tpu.dimension_semantics<parallel>, #tpu.dimension_semantics<parallel>, #tpu.dimension_semantics<arbitrary>], iteration_bounds = array<i64: 2, 1, 1>, scalar_prefetch = 0 : i64, scratch_operands = 0 : i64, tpu.core_type = #tpu.core_type<tc>, window_params = [{transform_indices = @transform_0, window_bounds = array<i64: 256, 128>}, {transform_indices = @transform_1, window_bounds = array<i64: 128, 128>}, {transform_indices = @transform_2, window_bounds = array<i64: 1, 128>}, {transform_indices = @transform_3, window_bounds = array<i64: 256, 128>}]} {
    %c0_i32 = arith.constant 0 : i32
    %0 = arith.cmpi eq, %arg2, %c0_i32 : i32
    %1 = arith.extui %0 : i1 to i32
    %c0_i32_0 = arith.constant 0 : i32
    %2 = arith.cmpi ne, %1, %c0_i32_0 : i32
    scf.if %2 {
      %cst_10 = arith.constant 0.000000e+00 : f32
      %12 = vector.broadcast %cst_10 : f32 to vector<256x128xf32>
      %c0_11 = arith.constant 0 : index
      %c0_12 = arith.constant 0 : index
      %13 = vector.load %arg6[%c0_11, %c0_12] : memref<256x128xf32, #tpu.memory_space<vmem>>, vector<256x128xf32>
      tpu.vector_store %arg6[%c0_11, %c0_12], %12 {strides = array<i32>} : memref<256x128xf32, #tpu.memory_space<vmem>>, vector<256x128xf32>,
    } else {
    }
    %c0 = arith.constant 0 : index
    %c0_1 = arith.constant 0 : index
    %3 = vector.load %arg6[%c0, %c0_1] : memref<256x128xf32, #tpu.memory_space<vmem>>, vector<256x128xf32>
    %c0_2 = arith.constant 0 : index
    %c0_3 = arith.constant 0 : index
    %4 = vector.load %arg3[%c0_2, %c0_3] : memref<256x128xbf16, #tpu.memory_space<vmem>>, vector<256x128xbf16>
    %c0_4 = arith.constant 0 : index
    %c0_5 = arith.constant 0 : index
    %5 = vector.load %arg4[%c0_4, %c0_5] : memref<128x128xbf16, #tpu.memory_space<vmem>>, vector<128x128xbf16>
    %cst = arith.constant dense<0.000000e+00> : vector<256x128xf32>
    %6 = tpu.matmul %4, %5, %cst {dimension_numbers = #tpu.dot_dimension_numbers<[1], [0], [0], [1], [0, 0, 1, 1], [], []>} : vector<256x128xbf16>, vector<128x128xbf16>, vector<256x128xf32> -> vector<256x128xf32>
    %7 = arith.addf %3, %6 : vector<256x128xf32>
    %c0_6 = arith.constant 0 : index
    %c0_7 = arith.constant 0 : index
    %8 = vector.load %arg6[%c0_6, %c0_7] : memref<256x128xf32, #tpu.memory_space<vmem>>, vector<256x128xf32>
    tpu.vector_store %arg6[%c0_6, %c0_7], %7 {strides = array<i32>} : memref<256x128xf32, #tpu.memory_space<vmem>>, vector<256x128xf32>,
    %c0_i32_8 = arith.constant 0 : i32
    %9 = arith.cmpi eq, %arg2, %c0_i32_8 : i32
    %10 = arith.extui %9 : i1 to i32
    %c0_i32_9 = arith.constant 0 : i32
    %11 = arith.cmpi ne, %10, %c0_i32_9 : i32
    scf.if %11 {
      %c0_10 = arith.constant 0 : index
      %c0_11 = arith.constant 0 : index
      %12 = vector.load %arg6[%c0_10, %c0_11] : memref<256x128xf32, #tpu.memory_space<vmem>>, vector<256x128xf32>
      %c0_12 = arith.constant 0 : index
      %c0_13 = arith.constant 0 : index
      %13 = vector.load %arg5[%c0_12, %c0_13] : memref<1x128xf32, #tpu.memory_space<vmem>>, vector<1x128xf32>
      %14 = vector.broadcast %13 : vector<1x128xf32> to vector<256x128xf32>
      %15 = arith.addf %12, %14 : vector<256x128xf32>
      %c0_14 = arith.constant 0 : index
      %c0_15 = arith.constant 0 : index
      %16 = vector.load %arg6[%c0_14, %c0_15] : memref<256x128xf32, #tpu.memory_space<vmem>>, vector<256x128xf32>
      tpu.vector_store %arg6[%c0_14, %c0_15], %15 {strides = array<i32>} : memref<256x128xf32, #tpu.memory_space<vmem>>, vector<256x128xf32>,
    } else {
    }
    return
  }
  func.func @transform_0(%arg0: i32, %arg1: i32, %arg2: i32) -> (i32, i32) {
    %c0_i32 = arith.constant 0 : i32
    return %arg0, %arg2 : i32, i32
  }
  func.func @transform_1(%arg0: i32, %arg1: i32, %arg2: i32) -> (i32, i32) {
    %c0_i32 = arith.constant 0 : i32
    return %arg2, %arg1 : i32, i32
  }
  func.func @transform_2(%arg0: i32, %arg1: i32, %arg2: i32) -> (i32, i32) {
    %c0_i32 = arith.constant 0 : i32
    %c0_i32_0 = arith.constant 0 : i32
    return %c0_i32, %arg1 : i32, i32
  }
  func.func @transform_3(%arg0: i32, %arg1: i32, %arg2: i32) -> (i32, i32) {
    %c0_i32 = arith.constant 0 : i32
    return %arg0, %arg1 : i32, i32
  }
}

module attributes {stable_mosaic.version = 11 : i64} {
  func.func @_groupnorm_mish_kernel(%arg0: i32, %arg1: memref<1x256x32xf32, #tpu.memory_space<vmem>>, %arg2: memref<32x32xf32, #tpu.memory_space<vmem>>, %arg3: memref<1x32xf32, #tpu.memory_space<vmem>>, %arg4: memref<1x32xf32, #tpu.memory_space<vmem>>, %arg5: memref<1x256x32xf32, #tpu.memory_space<vmem>>) attributes {dimension_semantics = [#tpu.dimension_semantics<parallel>], iteration_bounds = array<i64: 2>, scalar_prefetch = 0 : i64, scratch_operands = 0 : i64, tpu.core_type = #tpu.core_type<tc>, window_params = [{transform_indices = @transform_0, window_bounds = array<i64: 1, 256, 32>}, {pipeline_mode = #tpu.pipeline_mode<synchronous>, transform_indices = @transform_1, window_bounds = array<i64: 32, 32>}, {pipeline_mode = #tpu.pipeline_mode<synchronous>, transform_indices = @transform_2, window_bounds = array<i64: 1, 32>}, {pipeline_mode = #tpu.pipeline_mode<synchronous>, transform_indices = @transform_3, window_bounds = array<i64: 1, 32>}, {transform_indices = @transform_4, window_bounds = array<i64: 1, 256, 32>}]} {
    %c0 = arith.constant 0 : index
    %c0_0 = arith.constant 0 : index
    %c0_1 = arith.constant 0 : index
    %0 = vector.load %arg1[%c0, %c0_0, %c0_1] : memref<1x256x32xf32, #tpu.memory_space<vmem>>, vector<1x256x32xf32>
    %1 = vector.shape_cast %0 : vector<1x256x32xf32> to vector<256x32xf32>
    %c0_2 = arith.constant 0 : index
    %c0_3 = arith.constant 0 : index
    %2 = vector.load %arg2[%c0_2, %c0_3] : memref<32x32xf32, #tpu.memory_space<vmem>>, vector<32x32xf32>
    %cst = arith.constant dense<0.000000e+00> : vector<256x32xf32>
    %3 = tpu.matmul %1, %2, %cst {dimension_numbers = #tpu.dot_dimension_numbers<[1], [0], [0], [1], [0, 0, 1, 1], [], []>} : vector<256x32xf32>, vector<32x32xf32>, vector<256x32xf32> -> vector<256x32xf32>
    %cst_4 = arith.constant dense<0.000000e+00> : vector<32xf32>
    %4 = vector.multi_reduction <add>, %3, %cst_4 [0] : vector<256x32xf32> to vector<32xf32>
    %5 = vector.shape_cast %4 : vector<32xf32> to vector<1x32xf32>
    %6 = arith.mulf %1, %1 : vector<256x32xf32>
    %cst_5 = arith.constant dense<0.000000e+00> : vector<256x32xf32>
    %7 = tpu.matmul %6, %2, %cst_5 {dimension_numbers = #tpu.dot_dimension_numbers<[1], [0], [0], [1], [0, 0, 1, 1], [], []>} : vector<256x32xf32>, vector<32x32xf32>, vector<256x32xf32> -> vector<256x32xf32>
    %cst_6 = arith.constant dense<0.000000e+00> : vector<32xf32>
    %8 = vector.multi_reduction <add>, %7, %cst_6 [0] : vector<256x32xf32> to vector<32xf32>
    %9 = vector.shape_cast %8 : vector<32xf32> to vector<1x32xf32>
    %10 = arith.mulf %5, %5 : vector<1x32xf32>
    %11 = arith.subf %9, %10 : vector<1x32xf32>
    %cst_7 = arith.constant 9.99999974E-6 : f32
    %12 = vector.broadcast %cst_7 : f32 to vector<1x32xf32>
    %13 = arith.addf %11, %12 : vector<1x32xf32>
    %14 = math.rsqrt %13 : vector<1x32xf32>
    %c0_8 = arith.constant 0 : index
    %c0_9 = arith.constant 0 : index
    %15 = vector.load %arg3[%c0_8, %c0_9] : memref<1x32xf32, #tpu.memory_space<vmem>>, vector<1x32xf32>
    %16 = arith.mulf %15, %14 : vector<1x32xf32>
    %c0_10 = arith.constant 0 : index
    %c0_11 = arith.constant 0 : index
    %17 = vector.load %arg4[%c0_10, %c0_11] : memref<1x32xf32, #tpu.memory_space<vmem>>, vector<1x32xf32>
    %18 = arith.mulf %5, %16 : vector<1x32xf32>
    %19 = arith.subf %17, %18 : vector<1x32xf32>
    %20 = vector.broadcast %16 : vector<1x32xf32> to vector<256x32xf32>
    %21 = arith.mulf %1, %20 : vector<256x32xf32>
    %22 = vector.broadcast %19 : vector<1x32xf32> to vector<256x32xf32>
    %23 = arith.addf %21, %22 : vector<256x32xf32>
    %cst_12 = arith.constant 0.000000e+00 : f32
    %24 = vector.broadcast %cst_12 : f32 to vector<256x32xf32>
    %25 = arith.maximumf %23, %24 : vector<256x32xf32>
    %26 = math.absf %23 : vector<256x32xf32>
    %cst_13 = arith.constant 0.000000e+00 : f32
    %27 = vector.broadcast %cst_13 : f32 to vector<256x32xf32>
    %28 = arith.subf %27, %26 : vector<256x32xf32>
    %29 = math.exp %28 : vector<256x32xf32>
    %cst_14 = arith.constant 1.000000e+00 : f32
    %30 = vector.broadcast %cst_14 : f32 to vector<256x32xf32>
    %31 = arith.addf %30, %29 : vector<256x32xf32>
    %32 = math.log %31 : vector<256x32xf32>
    %33 = arith.addf %25, %32 : vector<256x32xf32>
    %34 = math.tanh %33 : vector<256x32xf32>
    %35 = arith.mulf %23, %34 : vector<256x32xf32>
    %c0_15 = arith.constant 0 : index
    %c0_16 = arith.constant 0 : index
    %c0_17 = arith.constant 0 : index
    %36 = vector.load %arg5[%c0_15, %c0_16, %c0_17] : memref<1x256x32xf32, #tpu.memory_space<vmem>>, vector<1x256x32xf32>
    %37 = vector.shape_cast %36 : vector<1x256x32xf32> to vector<256x32xf32>
    %38 = vector.shape_cast %35 : vector<256x32xf32> to vector<1x256x32xf32>
    tpu.vector_store %arg5[%c0_15, %c0_16, %c0_17], %38 {strides = array<i32>} : memref<1x256x32xf32, #tpu.memory_space<vmem>>, vector<1x256x32xf32>,
    return
  }
  func.func @transform_0(%arg0: i32) -> (i32, i32, i32) {
    %c0_i32 = arith.constant 0 : i32
    %c0_i32_0 = arith.constant 0 : i32
    %c0_i32_1 = arith.constant 0 : i32
    return %arg0, %c0_i32, %c0_i32_0 : i32, i32, i32
  }
  func.func @transform_1(%arg0: i32) -> (i32, i32) {
    %c0_i32 = arith.constant 0 : i32
    %c0_i32_0 = arith.constant 0 : i32
    %c0_i32_1 = arith.constant 0 : i32
    return %c0_i32, %c0_i32_0 : i32, i32
  }
  func.func @transform_2(%arg0: i32) -> (i32, i32) {
    %c0_i32 = arith.constant 0 : i32
    %c0_i32_0 = arith.constant 0 : i32
    %c0_i32_1 = arith.constant 0 : i32
    return %c0_i32, %c0_i32_0 : i32, i32
  }
  func.func @transform_3(%arg0: i32) -> (i32, i32) {
    %c0_i32 = arith.constant 0 : i32
    %c0_i32_0 = arith.constant 0 : i32
    %c0_i32_1 = arith.constant 0 : i32
    return %c0_i32, %c0_i32_0 : i32, i32
  }
  func.func @transform_4(%arg0: i32) -> (i32, i32, i32) {
    %c0_i32 = arith.constant 0 : i32
    %c0_i32_0 = arith.constant 0 : i32
    %c0_i32_1 = arith.constant 0 : i32
    return %arg0, %c0_i32, %c0_i32_0 : i32, i32, i32
  }
}

</mosaic_0001>

<bundles_post_ra>
// kernel: _lambda_.2
= control target key start
LH: loop header
LB: loop body
LE: loop exit
PB: predicated region body
PF: predicated region fallthrough
CT: control target
= control target key end

     0   :  { %s1181_s12 = smov 0   ;;  %s1183_s13 = smov 0   ;;  %s1331_s0 = inlined_call_operand.vmem [shape: bf16[512,128], index: 0, kind: input, shape index: {}]   ;;  %s1332_s1 = inlined_call_operand.vmem [shape: bf16[128,128], index: 1, kind: input, shape index: {}]   ;;  %s1333_s2 = inlined_call_operand.vmem [shape: f32[1,128], index: 2, kind: input, shape index: {}]   ;;  %s1334_s3 = inlined_call_operand.vmem [shape: f32[512,128], index: 3, kind: output, shape index: {}]  }
   0x1   :  { %s1185_s14 = smov 0  }
   0x2 LB: > { %s32_s15 = sadd.s32 1, %s1155_s13  ;;  %p968_p0 = scmp.ge.s32.totalorder %s1159_s14, 1  ;;  %s1159_s14 = sphi %s1185_s14, %s13_s14   ;;  %s1155_s13 = sphi %s1183_s13, %s1336_s13   ;;  %s1151_s12 = sphi %s1181_s12, %s1335_s12  }
   0x3   : > { %p34_p1 = scmp.ge.s32.totalorder %s32_s15, 2  ;;  %p188_p2 = scmp.lt.s32.totalorder %s1159_s14, 3 }
   0x5   : > { %s1338_s15 = smov (%p34_p1, %s32_s15), 0  ;;  %p189_p3 = pnand %p968_p0, %p188_p2 }
   0x6   : > { %v1113_v0 = vld [vmem:[%s1332_s1] sm:$0xff] (!%p189_p3)   ;;  %s969_s18 = sshll.u32 (!%p189_p3), %s1151_s12, 5  ;;  %v1114_v1 = vld [vmem:[%s1332_s1 + $0x8] sm:$0xff] (!%p189_p3)   ;;  %v1115_v2 = vld [vmem:[%s1332_s1 + $0x10] sm:$0xff] (!%p189_p3)  }
   0x7   : > { %192 = sbr.rel (%p189_p3) target bundleno = 281 (0x119), region = 32  ;;  %p230_p4 = scmp.lt.s32.totalorder (!%p189_p3), %s969_s18, 63  ;;  %1024 = vmatprep.subr.bf16.mxu0 (!%p189_p3), %v1113_v0  ;;  %1072 = vmatprep.subr.bf16.mxu1 (!%p189_p3), %v1113_v0  ;;  %v1116_v3 = vld [vmem:[%s1332_s1 + $0x18] sm:$0xff] (!%p189_p3)   ;;  %v1117_v6 = vld [vmem:[%s1332_s1 + $0x20] sm:$0xff] (!%p189_p3)   ;;  %v1118_v7 = vld [vmem:[%s1332_s1 + $0x28] sm:$0xff] (!%p189_p3)  }
   0x8   : > { %1025 = vmatpush3.bf16.msra.mxu0 (!%p189_p3), %v1113_v0  ;;  %1080 = vmatpush3.bf16.msra.mxu1 (!%p189_p3), %v1113_v0  ;;  %v1119_v8 = vld [vmem:[%s1332_s1 + $0x30] sm:$0xff] (!%p189_p3)   ;;  %v1120_v9 = vld [vmem:[%s1332_s1 + $0x38] sm:$0xff] (!%p189_p3)   ;;  %v1251_v25 = vld [vmem:[%s1333_s2] ss:$0 sm:$0xff] (!%p189_p3) }
   0x9   : > { %1026 = vmatprep.subr.bf16.mxu0 (!%p189_p3), %v1114_v1  ;;  %1073 = vmatprep.subr.bf16.mxu1 (!%p189_p3), %v1114_v1 }
   0xc   : > { %1027 = vmatpush3.bf16.msra.mxu0 (!%p189_p3), %v1114_v1  ;;  %1081 = vmatpush3.bf16.msra.mxu1 (!%p189_p3), %v1114_v1 }
   0xd   : > { %1028 = vmatprep.subr.bf16.mxu0 (!%p189_p3), %v1115_v2  ;;  %1074 = vmatprep.subr.bf16.mxu1 (!%p189_p3), %v1115_v2 }
   0xe   : > { %s1340_s18 = smov (!%p230_p4, %s969_s18), 63 }
   0xf   : > { %s970_s23 = sshll.u32 %s1340_s18, 2  ;;  %s972_s10 = sshll.u32 %s1340_s18, 3 }
  0x10   : > { %s1214_s26 = scalar_lea.vmem %s1331_s0, %s970_s23  ;;  %1029 = vmatpush3.bf16.msra.mxu0 %v1115_v2  ;;  %1082 = vmatpush3.bf16.msra.mxu1 %v1115_v2  ;;  %s1256_s19 = scalar_lea.vmem %s1334_s3, %s972_s10 }
  0x11   : > { %v1121_v4 = vld [vmem:[%s1214_s26] sm:$0xff]   ;;  %1030 = vmatprep.subr.bf16.mxu0 %v1116_v3  ;;  %1075 = vmatprep.subr.bf16.mxu1 %v1116_v3  ;;  %v1123_v10 = vld [vmem:[%s1214_s26 + $0x8] sm:$0xff]   ;;  %v1125_v12 = vld [vmem:[%s1214_s26 + $0x10] sm:$0xff]  }
  0x12   : > { %v1122_v5 = vld [vmem:[%s1214_s26 + $0x40] sm:$0xff]   ;;  %1040 = vmatprep.mubr.bf16.mxu0 %v1121_v4  ;;  %v1124_v11 = vld [vmem:[%s1214_s26 + $0x48] sm:$0xff]   ;;  %v1126_v13 = vld [vmem:[%s1214_s26 + $0x50] sm:$0xff]  }
  0x13   : > { %1056 = vmatprep.mubr.bf16.mxu1 %v1122_v5  ;;  %v1127_v14 = vld [vmem:[%s1214_s26 + $0x18] sm:$0xff]   ;;  %v1129_v16 = vld [vmem:[%s1214_s26 + $0x20] sm:$0xff]   ;;  %v1131_v18 = vld [vmem:[%s1214_s26 + $0x28] sm:$0xff]  }
  0x14   : > { %1031 = vmatpush3.bf16.msra.mxu0 %v1116_v3  ;;  %1083 = vmatpush3.bf16.msra.mxu1 %v1116_v3  ;;  %v1128_v15 = vld [vmem:[%s1214_s26 + $0x58] sm:$0xff]   ;;  %v1130_v17 = vld [vmem:[%s1214_s26 + $0x60] sm:$0xff]   ;;  %v1132_v19 = vld [vmem:[%s1214_s26 + $0x68] sm:$0xff]  }
  0x15   : > { %1032 = vmatprep.subr.bf16.mxu0 %v1117_v6  ;;  %1076 = vmatprep.subr.bf16.mxu1 %v1117_v6  ;;  %v1133_v20 = vld [vmem:[%s1214_s26 + $0x30] sm:$0xff]   ;;  %v1135_v22 = vld [vmem:[%s1214_s26 + $0x38] sm:$0xff]  }
  0x16   : > { %v1134_v21 = vld [vmem:[%s1214_s26 + $0x70] sm:$0xff]   ;;  %v1136_v23 = vld [vmem:[%s1214_s26 + $0x78] sm:$0xff]  }
  0x18   : > { %1033 = vmatpush3.bf16.msra.mxu0 %v1117_v6  ;;  %1084 = vmatpush3.bf16.msra.mxu1 %v1117_v6 }
  0x19   : > { %1034 = vmatprep.subr.bf16.mxu0 %v1118_v7  ;;  %1077 = vmatprep.subr.bf16.mxu1 %v1118_v7 }
  0x1c   : > { %1035 = vmatpush3.bf16.msra.mxu0 %v1118_v7  ;;  %1085 = vmatpush3.bf16.msra.mxu1 %v1118_v7 }
  0x1d   : > { %1036 = vmatprep.subr.bf16.mxu0 %v1119_v8  ;;  %1078 = vmatprep.subr.bf16.mxu1 %v1119_v8 }
  0x20   : > { %1037 = vmatpush3.bf16.msra.mxu0 %v1119_v8  ;;  %1086 = vmatpush3.bf16.msra.mxu1 %v1119_v8 }
  0x21   : > { %1038 = vmatprep.subr.bf16.mxu0 %v1120_v9  ;;  %1079 = vmatprep.subr.bf16.mxu1 %v1120_v9 }
  0x24   : > { %1039 = vmatpush3.bf16.msra.mxu0 %v1120_v9  ;;  %1087 = vmatpush3.bf16.msra.mxu1 %v1120_v9 }
  0x27   : > { %1041 = vmatmul.mubr.bf16.vlgmr.msra.gmra.mrb[0].mxu0 %v1123_v10  ;;  %1057 = vmatmul.mubr.bf16.vlgmr.msra.gmra.mrb[0].mxu1 %v1124_v11 }
  0x28   : > { %1044 = vmatprep.mubr.bf16.mxu0 %v1125_v12  ;;  %1060 = vmatprep.mubr.bf16.mxu1 %v1126_v13 }
  0x2f   : > { %1045 = vmatmul.mubr.bf16.gmra.mrb[4].mxu0 %v1127_v14  ;;  %1061 = vmatmul.mubr.bf16.gmra.mrb[4].mxu1 %v1128_v15 }
  0x30   : > { %1048 = vmatprep.mubr.bf16.mxu0 %v1129_v16  ;;  %1064 = vmatprep.mubr.bf16.mxu1 %v1130_v17 }
  0x37   : > { %1049 = vmatmul.mubr.bf16.gmra.mrb[8].mxu0 %v1131_v18  ;;  %1065 = vmatmul.mubr.bf16.gmra.mrb[8].mxu1 %v1132_v19 }
  0x38   : > { %1052 = vmatprep.mubr.bf16.mxu0 %v1133_v20  ;;  %1068 = vmatprep.mubr.bf16.mxu1 %v1134_v21 }
  0x3f   : > { %1053 = vmatmul.mubr.bf16.gmra.mrb[12].mxu0 %v1135_v22  ;;  %1069 = vmatmul.mubr.bf16.gmra.mrb[12].mxu1 %v1136_v23 }
  0xfa   : > { %v1042_v24 = vpop.f32.mrb[0].mxu0  ;;  %v1058_v26 = vpop.f32.mrb[0].mxu1 }
  0xfb   : > { %v554_v27 = vpop.f32.mrb[1].mxu0  ;;  %v618_v28 = vpop.f32.mrb[1].mxu1  ;;  %v789_v31 = vadd.f32 %v1042_v24, %v1251_v25  ;;  %v805_v32 = vadd.f32 %v1058_v26, %v1251_v25 }
  0xfc   : > { %v1043_v29 = vpop.f32.mrb[2].mxu0  ;;  %v1059_v30 = vpop.f32.mrb[2].mxu1  ;;  %v787_v35 = vadd.f32 %v1251_v25, %v554_v27  ;;  %v803_v36 = vadd.f32 %v1251_v25, %v618_v28 }
  0xfd   : > { %v557_v33 = vpop.f32.mrb[3].mxu0  ;;  %v621_v34 = vpop.f32.mrb[3].mxu1  ;;  %821 = vst [vmem:[%s1256_s19 + $0x10] sm:$0xff] %v789_v31  ;;  %837 = vst [vmem:[%s1256_s19 + $0x90] sm:$0xff] %v805_v32  ;;  %v790_v37 = vadd.f32 %v1043_v29, %v1251_v25  ;;  %v806_v38 = vadd.f32 %v1059_v30, %v1251_v25 }
  0xfe   : > { %819 = vst [vmem:[%s1256_s19] sm:$0xff] %v787_v35  ;;  %835 = vst [vmem:[%s1256_s19 + $0x80] sm:$0xff] %v803_v36  ;;  %v788_v39 = vadd.f32 %v1251_v25, %v557_v33  ;;  %v804_v40 = vadd.f32 %v1251_v25, %v621_v34 }
  0xff   : > { %822 = vst [vmem:[%s1256_s19 + $0x18] sm:$0xff] %v790_v37  ;;  %838 = vst [vmem:[%s1256_s19 + $0x98] sm:$0xff] %v806_v38 }
 0x100   : > { %820 = vst [vmem:[%s1256_s19 + $0x8] sm:$0xff] %v788_v39  ;;  %836 = vst [vmem:[%s1256_s19 + $0x88] sm:$0xff] %v804_v40 }
 0x102   : > { %v1046_v41 = vpop.f32.mrb[4].mxu0  ;;  %v1062_v42 = vpop.f32.mrb[4].mxu1 }
 0x103   : > { %v570_v43 = vpop.f32.mrb[5].mxu0  ;;  %v634_v44 = vpop.f32.mrb[5].mxu1  ;;  %v793_v47 = vadd.f32 %v1046_v41, %v1251_v25  ;;  %v809_v48 = vadd.f32 %v1062_v42, %v1251_v25 }
 0x104   : > { %v1047_v45 = vpop.f32.mrb[6].mxu0  ;;  %v1063_v46 = vpop.f32.mrb[6].mxu1  ;;  %v791_v51 = vadd.f32 %v1251_v25, %v570_v43  ;;  %v807_v52 = vadd.f32 %v1251_v25, %v634_v44 }
 0x105   : > { %v573_v49 = vpop.f32.mrb[7].mxu0  ;;  %v637_v50 = vpop.f32.mrb[7].mxu1  ;;  %825 = vst [vmem:[%s1256_s19 + $0x30] sm:$0xff] %v793_v47  ;;  %841 = vst [vmem:[%s1256_s19 + $0xb0] sm:$0xff] %v809_v48  ;;  %v794_v53 = vadd.f32 %v1047_v45, %v1251_v25  ;;  %v810_v54 = vadd.f32 %v1063_v46, %v1251_v25 }
 0x106   : > { %823 = vst [vmem:[%s1256_s19 + $0x20] sm:$0xff] %v791_v51  ;;  %839 = vst [vmem:[%s1256_s19 + $0xa0] sm:$0xff] %v807_v52  ;;  %v792_v55 = vadd.f32 %v1251_v25, %v573_v49  ;;  %v808_v56 = vadd.f32 %v1251_v25, %v637_v50 }
 0x107   : > { %826 = vst [vmem:[%s1256_s19 + $0x38] sm:$0xff] %v794_v53  ;;  %842 = vst [vmem:[%s1256_s19 + $0xb8] sm:$0xff] %v810_v54 }
 0x108   : > { %824 = vst [vmem:[%s1256_s19 + $0x28] sm:$0xff] %v792_v55  ;;  %840 = vst [vmem:[%s1256_s19 + $0xa8] sm:$0xff] %v808_v56 }
 0x10a   : > { %v1050_v57 = vpop.f32.mrb[8].mxu0  ;;  %v1066_v58 = vpop.f32.mrb[8].mxu1 }
 0x10b   : > { %v586_v59 = vpop.f32.mrb[9].mxu0  ;;  %v650_v60 = vpop.f32.mrb[9].mxu1  ;;  %v797_v63 = vadd.f32 %v1050_v57, %v1251_v25  ;;  %v813_v0 = vadd.f32 %v1066_v58, %v1251_v25 }
 0x10c   : > { %v1051_v61 = vpop.f32.mrb[10].mxu0  ;;  %v1067_v62 = vpop.f32.mrb[10].mxu1  ;;  %v795_v3 = vadd.f32 %v1251_v25, %v586_v59  ;;  %v811_v4 = vadd.f32 %v1251_v25, %v650_v60 }
 0x10d   : > { %v589_v1 = vpop.f32.mrb[11].mxu0  ;;  %v653_v2 = vpop.f32.mrb[11].mxu1  ;;  %829 = vst [vmem:[%s1256_s19 + $0x50] sm:$0xff] %v797_v63  ;;  %845 = vst [vmem:[%s1256_s19 + $0xd0] sm:$0xff] %v813_v0  ;;  %v798_v5 = vadd.f32 %v1051_v61, %v1251_v25  ;;  %v814_v6 = vadd.f32 %v1067_v62, %v1251_v25 }
 0x10e   : > { %827 = vst [vmem:[%s1256_s19 + $0x40] sm:$0xff] %v795_v3  ;;  %843 = vst [vmem:[%s1256_s19 + $0xc0] sm:$0xff] %v811_v4  ;;  %v796_v7 = vadd.f32 %v1251_v25, %v589_v1  ;;  %v812_v8 = vadd.f32 %v1251_v25, %v653_v2 }
 0x10f   : > { %830 = vst [vmem:[%s1256_s19 + $0x58] sm:$0xff] %v798_v5  ;;  %846 = vst [vmem:[%s1256_s19 + $0xd8] sm:$0xff] %v814_v6 }
 0x110   : > { %828 = vst [vmem:[%s1256_s19 + $0x48] sm:$0xff] %v796_v7  ;;  %844 = vst [vmem:[%s1256_s19 + $0xc8] sm:$0xff] %v812_v8 }
 0x112   : > { %v1054_v9 = vpop.f32.mrb[12].mxu0  ;;  %v1070_v10 = vpop.f32.mrb[12].mxu1 }
 0x113   : > { %v602_v11 = vpop.f32.mrb[13].mxu0  ;;  %v666_v12 = vpop.f32.mrb[13].mxu1  ;;  %v801_v15 = vadd.f32 %v1054_v9, %v1251_v25  ;;  %v817_v16 = vadd.f32 %v1070_v10, %v1251_v25 }
 0x114   : > { %v1055_v13 = vpop.f32.mrb[14].mxu0  ;;  %v1071_v14 = vpop.f32.mrb[14].mxu1  ;;  %v799_v19 = vadd.f32 %v1251_v25, %v602_v11  ;;  %v815_v20 = vadd.f32 %v1251_v25, %v666_v12 }
 0x115   : > { %v605_v17 = vpop.f32.mrb[15].mxu0  ;;  %v669_v18 = vpop.f32.mrb[15].mxu1  ;;  %833 = vst [vmem:[%s1256_s19 + $0x70] sm:$0xff] %v801_v15  ;;  %849 = vst [vmem:[%s1256_s19 + $0xf0] sm:$0xff] %v817_v16  ;;  %v802_v21 = vadd.f32 %v1055_v13, %v1251_v25  ;;  %v818_v22 = vadd.f32 %v1071_v14, %v1251_v25 }
 0x116   : > { %831 = vst [vmem:[%s1256_s19 + $0x60] sm:$0xff] %v799_v19  ;;  %847 = vst [vmem:[%s1256_s19 + $0xe0] sm:$0xff] %v815_v20  ;;  %v800_v23 = vadd.f32 %v1251_v25, %v605_v17  ;;  %v816_v24 = vadd.f32 %v1251_v25, %v669_v18 }
 0x117   : > { %834 = vst [vmem:[%s1256_s19 + $0x78] sm:$0xff] %v802_v21  ;;  %850 = vst [vmem:[%s1256_s19 + $0xf8] sm:$0xff] %v818_v22 }
 0x118   : > { %832 = vst [vmem:[%s1256_s19 + $0x68] sm:$0xff] %v800_v23  ;;  %848 = vst [vmem:[%s1256_s19 + $0xe8] sm:$0xff] %v816_v24 }
 0x119 PF: > { %s13_s14 = sadd.s32 1, %s1159_s14   ;;  %s1335_s12 = smov %s1155_s13 }
 0x11a   : > { %p10_p5 = scmp.ge.s32.totalorder %s13_s14, 4   ;;  %s1336_s13 = smov %s1338_s15 }
 0x11c   :  { %12 = sbr.rel (!%p10_p5) target bundleno = 2 (0x2), region = 76 }

// kernel: _lambda_.3
= control target key start
LH: loop header
LB: loop body
LE: loop exit
PB: predicated region body
PF: predicated region fallthrough
CT: control target
= control target key end

     0   :  { %9 = vsyncpa [#allocation3], 0  ;;  %s3075_s0 = inlined_call_operand.vmem [shape: f32[2,256,32], index: 0, kind: input, shape index: {}]   ;;  %s3076_s1 = inlined_call_operand.vmem [shape: f32[32,32], index: 1, kind: input, shape index: {}]   ;;  %s3077_s2 = inlined_call_operand.vmem [shape: f32[1,32], index: 2, kind: input, shape index: {}]   ;;  %s3078_s3 = inlined_call_operand.vmem [shape: f32[1,32], index: 3, kind: input, shape index: {}]   ;;  %s3079_s4 = inlined_call_operand.hbm [shape: f32[2,256,32], index: 4, kind: output, shape index: {}]  }
   0x1   :  { %11 = vsyncpa [#allocation3 + $0x1], 0  ;;  %s2195_s15 = smov 0   ;;  %s2197_s16 = smov 0  }
   0x2   :  { %s2199_s17 = smov 0   ;;  %s2201_s18 = smov 0  }
   0x3 LB: > { %s2216_s19 = sadd.s32 4294967295, %s2165_s18   ;;  %s1590_s20 = sadd.s32 4294967294, %s2165_s18   ;;  %s2165_s18 = sphi %s2201_s18, %s3137_s18   ;;  %s2161_s17 = sphi %s2199_s17, %s3136_s17   ;;  %s2157_s16 = sphi %s2197_s16, %s3135_s16   ;;  %s2153_s15 = sphi %s2195_s15, %s3134_s15  }
   0x4   : > { %s2220_s21 = sadd.s32 1, %s2165_s18   ;;  %s113_s22 = sadd.s32 1, %s2161_s17 }
   0x5   : > { %s110_s23 = ssub.s32 %s2165_s18, %s2220_s21  ;;  %p123_p0 = scmp.ne.s32.totalorder %s2161_s17, %s2157_s16 }
   0x6   : > { %p111_p1 = scmp.eq.s32.totalorder %s110_s23, 0  ;;  %p124_p2 = scmp.eq.s32.totalorder %s2216_s19, 1 }
   0x7   : > { %p129_p3 = scmp.ne.s32.totalorder %s2157_s16, %s2153_s15  ;;  %p130_p4 = scmp.eq.s32.totalorder %s1590_s20, 1 }
   0x8   : > { %s2231_s24 = scalar_select %p111_p1, %s2161_s17, %s113_s22  }
   0x9   : > { %p2233_p5 = por %p124_p2, %p123_p0  ;;  %p2237_p6 = por %p130_p4, %p129_p3 }
   0xa   : > { %p1593_p7 = scmp.ge.s32.totalorder %s2165_s18, 1  ;;  %p165_p8 = scmp.lt.s32.totalorder %s2165_s18, 3 }
   0xc   : > { %p166_p9 = pnand %p1593_p7, %p165_p8 }
   0xe   : > { %169 = sbr.rel (%p166_p9) target bundleno = 491 (0x1eb), region = 36 }
  0x15   : > { %v228_v0 = vld [vmem:[%s3076_s1] sm:$0xff]  ;;  %v229_v1 = vld [vmem:[%s3076_s1 + $0x8] sm:$0xff]  ;;  %v230_v2 = vld [vmem:[%s3076_s1 + $0x10] sm:$0xff]  ;;  %p191_p10 = scmp.lt.s32.totalorder %s2216_s19, 1  ;;  %vm232_vm0 = vcmask 261120   ;;  %s188_s27 = sand.u32 1, %s2157_s16  }
  0x16   : > { %v1852_v3 = vpack.c.bf16 %v229_v1, %v228_v0  ;;  %v231_v4 = vld [vmem:[%s3076_s1 + $0x18] sm:$0xff]  ;;  %s2857_s28 = sshll.u32 %s188_s27, 8  ;;  %s1667_s30 = sshll.u32 %s2216_s19, 12 }
  0x17   : > { %v1856_v5 = vpack.c.bf16 %v231_v4, %v230_v2  ;;  %s192_s9 = scalar_select %p191_p10, %s2216_s19, 1 }
  0x18   : > { %1853 = vmatprep.subr.bf16.mxu0 %v1852_v3  ;;  %1861 = vmatprep.subr.bf16.mxu1 %v1852_v3  ;;  %s2892_s29 = scalar_lea.vmem [#allocation2], %s2857_s28  ;;  %s3021_s7 = scalar_lea.hbm %s3079_s4, %s1667_s30 }
  0x19   : > { %1855 = vmatpush3.bf16.msra.mxu0 %v1852_v3  ;;  %1863 = vmatpush3.bf16.msra.mxu1 %v1852_v3  ;;  %s1666_s10 = sshll.u32 %s192_s9, 8  ;;  %s1528_s5 = sshll.u32 %s2892_s29, 4  ;;  %s3023_s5 = int_to_ptr.vmem [resolvable:$true] %s1528_s5 }
  0x1a   : > { %1857 = vmatprep.subr.bf16.mxu0 %v1856_v5  ;;  %1865 = vmatprep.subr.bf16.mxu1 %v1856_v5  ;;  %s2260_s13 = scalar_lea.vmem %s3075_s0, %s1666_s10  ;;  %s3034_s8 = scalar_lea.sflag [#allocation3], %s188_s27 }
  0x1b   : > { %v2263_v6 = vld [vmem:[%s2260_s13] sm:$0xff]  ;;  %v2266_v7 = vld [vmem:[%s2260_s13 + $0x8] sm:$0xff]  ;;  %v2269_v8 = vld [vmem:[%s2260_s13 + $0x10] sm:$0xff]  ;;  %s2103_s9 = scalar_lea.vmem %s3023_s5, 4096  ;;  %s2167_s10 = smov [#allocation2]  }
  0x1c   : > { %v623_v9 = vmul.f32 %v2263_v6, %v2263_v6  ;;  %v624_v10 = vmul.f32 %v2266_v7, %v2266_v7  ;;  %v625_v11 = vmul.f32 %v2269_v8, %v2269_v8  ;;  %v2278_v12 = vld [vmem:[%s2260_s13 + $0x18] sm:$0xff]  ;;  %1748 = vmatprep.mubr.msk.f32.mxu0 %vm232_vm0, %v2263_v6  ;;  %v2283_v13 = vld [vmem:[%s2260_s13 + $0x20] sm:$0xff]  ;;  %v2297_v16 = vld [vmem:[%s2260_s13 + $0x28] sm:$0xff]  ;;  %p2104_p11 = scmp.ne.s32.totalorder %s3023_s5, %s2103_s9  ;;  %s2107_s11 = sshll.u32 %s2167_s10, 4  ;;  %s2108_s11 = int_to_ptr.vmem [resolvable:$false] %s2107_s11 }
  0x1d   : > { %1859 = vmatpush3.bf16.msra.mxu0 %v1856_v5  ;;  %1867 = vmatpush3.bf16.msra.mxu1 %v1856_v5  ;;  %v626_v14 = vmul.f32 %v2278_v12, %v2278_v12  ;;  %v627_v15 = vmul.f32 %v2283_v13, %v2283_v13  ;;  %v2300_v17 = vld [vmem:[%s2260_s13 + $0x30] sm:$0xff]  ;;  %v628_v18 = vmul.f32 %v2297_v16, %v2297_v16  ;;  %v2313_v20 = vld [vmem:[%s2260_s13 + $0x38] sm:$0xff]  ;;  %v2316_v21 = vld [vmem:[%s2260_s13 + $0x40] sm:$0xff]  ;;  %s2109_s12 = scalar_lea.vmem %s2108_s11, 8192  ;;  %p2110_p0 = scmp.lt.s32.totalorder %s3023_s5, %s2108_s11 }
  0x1e   : > { %1804 = vmatprep.mubr.msk.f32.mxu1 %vm232_vm0, %v623_v9  ;;  %v629_v19 = vmul.f32 %v2300_v17, %v2300_v17  ;;  %v630_v22 = vmul.f32 %v2313_v20, %v2313_v20  ;;  %v631_v23 = vmul.f32 %v2316_v21, %v2316_v21  ;;  %v2329_v24 = vld [vmem:[%s2260_s13 + $0x48] sm:$0xff]  ;;  %v2332_v25 = vld [vmem:[%s2260_s13 + $0x50] sm:$0xff]  ;;  %v2345_v28 = vld [vmem:[%s2260_s13 + $0x58] sm:$0xff]  ;;  %p2105_p12 = pnand %p2104_p11, %p2233_p5  ;;  %p2111_p1 = scmp.lt.s32.totalorder %s2109_s12, %s2103_s9 }
  0x1f   : > { %v632_v26 = vmul.f32 %v2329_v24, %v2329_v24  ;;  %v633_v27 = vmul.f32 %v2332_v25, %v2332_v25  ;;  %v2348_v29 = vld [vmem:[%s2260_s13 + $0x60] sm:$0xff]  ;;  %v634_v30 = vmul.f32 %v2345_v28, %v2345_v28  ;;  %v2361_v32 = vld [vmem:[%s2260_s13 + $0x68] sm:$0xff]  ;;  %v2364_v33 = vld [vmem:[%s2260_s13 + $0x70] sm:$0xff] }
  0x20   : > { %1749 = vmatmul.mubr.msk.f32.vlgmr.msra.gmra.mrb[0].mxu0 %vm232_vm0, %v2266_v7  ;;  %1805 = vmatmul.mubr.msk.f32.vlgmr.msra.gmra.mrb[0].mxu1 %vm232_vm0, %v624_v10  ;;  %v635_v31 = vmul.f32 %v2348_v29, %v2348_v29  ;;  %v636_v34 = vmul.f32 %v2361_v32, %v2361_v32  ;;  %v637_v35 = vmul.f32 %v2364_v33, %v2364_v33  ;;  %v2377_v36 = vld [vmem:[%s2260_s13 + $0x78] sm:$0xff]  ;;  %v2380_v37 = vld [vmem:[%s2260_s13 + $0x80] sm:$0xff]  ;;  %v2393_v40 = vld [vmem:[%s2260_s13 + $0x88] sm:$0xff]  ;;  %p2106_p13 = pneg %p2105_p12  ;;  %p2112_p2 = por %p2111_p1, %p2110_p0 }
  0x21   : > { %1751 = vmatprep.mubr.msk.f32.mxu0 %vm232_vm0, %v2269_v8  ;;  %1807 = vmatprep.mubr.msk.f32.mxu1 %vm232_vm0, %v625_v11  ;;  %v638_v38 = vmul.f32 %v2377_v36, %v2377_v36  ;;  %v639_v39 = vmul.f32 %v2380_v37, %v2380_v37  ;;  %v2396_v41 = vld [vmem:[%s2260_s13 + $0x90] sm:$0xff]  ;;  %v640_v42 = vmul.f32 %v2393_v40, %v2393_v40  ;;  %v2409_v44 = vld [vmem:[%s2260_s13 + $0x98] sm:$0xff]  ;;  %v2412_v45 = vld [vmem:[%s2260_s13 + $0xa0] sm:$0xff] }
  0x22   : > { %v641_v43 = vmul.f32 %v2396_v41, %v2396_v41  ;;  %v642_v46 = vmul.f32 %v2409_v44, %v2409_v44  ;;  %v643_v47 = vmul.f32 %v2412_v45, %v2412_v45  ;;  %v2425_v48 = vld [vmem:[%s2260_s13 + $0xa8] sm:$0xff]  ;;  %v2428_v49 = vld [vmem:[%s2260_s13 + $0xb0] sm:$0xff]  ;;  %v2441_v52 = vld [vmem:[%s2260_s13 + $0xb8] sm:$0xff]  ;;  %p2113_p3 = pnand %p2112_p2, %p2106_p13 }
  0x23   : > { %v644_v50 = vmul.f32 %v2425_v48, %v2425_v48  ;;  %v645_v51 = vmul.f32 %v2428_v49, %v2428_v49  ;;  %v2444_v53 = vld [vmem:[%s2260_s13 + $0xc0] sm:$0xff]  ;;  %v646_v54 = vmul.f32 %v2441_v52, %v2441_v52  ;;  %v2457_v56 = vld [vmem:[%s2260_s13 + $0xc8] sm:$0xff]  ;;  %v2460_v57 = vld [vmem:[%s2260_s13 + $0xd0] sm:$0xff] }
  0x24   : > { %1752 = vmatmul.mubr.msk.f32.gmra.mrb[2].mxu0 %vm232_vm0, %v2278_v12  ;;  %1808 = vmatmul.mubr.msk.f32.gmra.mrb[2].mxu1 %vm232_vm0, %v626_v14  ;;  %v647_v55 = vmul.f32 %v2444_v53, %v2444_v53  ;;  %v648_v58 = vmul.f32 %v2457_v56, %v2457_v56  ;;  %v649_v59 = vmul.f32 %v2460_v57, %v2460_v57  ;;  %v2473_v60 = vld [vmem:[%s2260_s13 + $0xd8] sm:$0xff]  ;;  %v2476_v61 = vld [vmem:[%s2260_s13 + $0xe0] sm:$0xff]  ;;  %v2489_v0 = vld [vmem:[%s2260_s13 + $0xe8] sm:$0xff] }
  0x25   : > { %1754 = vmatprep.mubr.msk.f32.mxu0 %vm232_vm0, %v2283_v13  ;;  %1810 = vmatprep.mubr.msk.f32.mxu1 %vm232_vm0, %v627_v15  ;;  %v650_v62 = vmul.f32 %v2473_v60, %v2473_v60  ;;  %v651_v63 = vmul.f32 %v2476_v61, %v2476_v61  ;;  %v2492_v1 = vld [vmem:[%s2260_s13 + $0xf0] sm:$0xff]  ;;  %v652_v2 = vmul.f32 %v2489_v0, %v2489_v0  ;;  %v2505_v4 = vld [vmem:[%s2260_s13 + $0xf8] sm:$0xff] }
  0x26   : > { %v653_v3 = vmul.f32 %v2492_v1, %v2492_v1  ;;  %v654_v5 = vmul.f32 %v2505_v4, %v2505_v4 }
  0x28   : > { %1755 = vmatmul.mubr.msk.f32.gmra.mrb[4].mxu0 %vm232_vm0, %v2297_v16  ;;  %1811 = vmatmul.mubr.msk.f32.gmra.mrb[4].mxu1 %vm232_vm0, %v628_v18 }
  0x29   : > { %1757 = vmatprep.mubr.msk.f32.mxu0 %vm232_vm0, %v2300_v17  ;;  %1813 = vmatprep.mubr.msk.f32.mxu1 %vm232_vm0, %v629_v19 }
  0x2c   : > { %1758 = vmatmul.mubr.msk.f32.gmra.mrb[6].mxu0 %vm232_vm0, %v2313_v20  ;;  %1814 = vmatmul.mubr.msk.f32.gmra.mrb[6].mxu1 %vm232_vm0, %v630_v22 }
  0x2d   : > { %1760 = vmatprep.mubr.msk.f32.mxu0 %vm232_vm0, %v2316_v21  ;;  %1816 = vmatprep.mubr.msk.f32.mxu1 %vm232_vm0, %v631_v23 }
  0x30   : > { %1761 = vmatmul.mubr.msk.f32.gmra.mrb[8].mxu0 %vm232_vm0, %v2329_v24  ;;  %1817 = vmatmul.mubr.msk.f32.gmra.mrb[8].mxu1 %vm232_vm0, %v632_v26 }
  0x31   : > { %1763 = vmatprep.mubr.msk.f32.mxu0 %vm232_vm0, %v2332_v25  ;;  %1819 = vmatprep.mubr.msk.f32.mxu1 %vm232_vm0, %v633_v27 }
  0x34   : > { %1764 = vmatmul.mubr.msk.f32.gmra.mrb[10].mxu0 %vm232_vm0, %v2345_v28  ;;  %1820 = vmatmul.mubr.msk.f32.gmra.mrb[10].mxu1 %vm232_vm0, %v634_v30 }
  0x35   : > { %1766 = vmatprep.mubr.msk.f32.mxu0 %vm232_vm0, %v2348_v29  ;;  %1822 = vmatprep.mubr.msk.f32.mxu1 %vm232_vm0, %v635_v31 }
  0x38   : > { %1767 = vmatmul.mubr.msk.f32.gmra.mrb[12].mxu0 %vm232_vm0, %v2361_v32  ;;  %1823 = vmatmul.mubr.msk.f32.gmra.mrb[12].mxu1 %vm232_vm0, %v636_v34 }
  0x39   : > { %1769 = vmatprep.mubr.msk.f32.mxu0 %vm232_vm0, %v2364_v33  ;;  %1825 = vmatprep.mubr.msk.f32.mxu1 %vm232_vm0, %v637_v35 }
  0x3c   : > { %1770 = vmatmul.mubr.msk.f32.gmra.mrb[14].mxu0 %vm232_vm0, %v2377_v36  ;;  %1826 = vmatmul.mubr.msk.f32.gmra.mrb[14].mxu1 %vm232_vm0, %v638_v38 }
  0x3d   : > { %1772 = vmatprep.mubr.msk.f32.mxu0 %vm232_vm0, %v2380_v37  ;;  %1828 = vmatprep.mubr.msk.f32.mxu1 %vm232_vm0, %v639_v39 }
  0x40   : > { %1773 = vmatmul.mubr.msk.f32.gmra.mrb[16].mxu0 %vm232_vm0, %v2393_v40  ;;  %1829 = vmatmul.mubr.msk.f32.gmra.mrb[16].mxu1 %vm232_vm0, %v640_v42 }
  0x41   : > { %1775 = vmatprep.mubr.msk.f32.mxu0 %vm232_vm0, %v2396_v41  ;;  %1831 = vmatprep.mubr.msk.f32.mxu1 %vm232_vm0, %v641_v43 }
  0x44   : > { %1776 = vmatmul.mubr.msk.f32.gmra.mrb[18].mxu0 %vm232_vm0, %v2409_v44  ;;  %1832 = vmatmul.mubr.msk.f32.gmra.mrb[18].mxu1 %vm232_vm0, %v642_v46 }
  0x45   : > { %1778 = vmatprep.mubr.msk.f32.mxu0 %vm232_vm0, %v2412_v45  ;;  %1834 = vmatprep.mubr.msk.f32.mxu1 %vm232_vm0, %v643_v47 }
  0x48   : > { %1779 = vmatmul.mubr.msk.f32.gmra.mrb[20].mxu0 %vm232_vm0, %v2425_v48  ;;  %1835 = vmatmul.mubr.msk.f32.gmra.mrb[20].mxu1 %vm232_vm0, %v644_v50 }
  0x49   : > { %1781 = vmatprep.mubr.msk.f32.mxu0 %vm232_vm0, %v2428_v49  ;;  %1837 = vmatprep.mubr.msk.f32.mxu1 %vm232_vm0, %v645_v51 }
  0x4c   : > { %1782 = vmatmul.mubr.msk.f32.gmra.mrb[22].mxu0 %vm232_vm0, %v2441_v52  ;;  %1838 = vmatmul.mubr.msk.f32.gmra.mrb[22].mxu1 %vm232_vm0, %v646_v54 }
  0x4d   : > { %1784 = vmatprep.mubr.msk.f32.mxu0 %vm232_vm0, %v2444_v53  ;;  %1840 = vmatprep.mubr.msk.f32.mxu1 %vm232_vm0, %v647_v55 }
  0x50   : > { %1785 = vmatmul.mubr.msk.f32.gmra.mrb[24].mxu0 %vm232_vm0, %v2457_v56  ;;  %1841 = vmatmul.mubr.msk.f32.gmra.mrb[24].mxu1 %vm232_vm0, %v648_v58 }
  0x51   : > { %1787 = vmatprep.mubr.msk.f32.mxu0 %vm232_vm0, %v2460_v57  ;;  %1843 = vmatprep.mubr.msk.f32.mxu1 %vm232_vm0, %v649_v59 }
  0x54   : > { %1788 = vmatmul.mubr.msk.f32.gmra.mrb[26].mxu0 %vm232_vm0, %v2473_v60  ;;  %1844 = vmatmul.mubr.msk.f32.gmra.mrb[26].mxu1 %vm232_vm0, %v650_v62 }
  0x55   : > { %1790 = vmatprep.mubr.msk.f32.mxu0 %vm232_vm0, %v2476_v61  ;;  %1846 = vmatprep.mubr.msk.f32.mxu1 %vm232_vm0, %v651_v63 }
  0x58   : > { %1791 = vmatmul.mubr.msk.f32.gmra.mrb[28].mxu0 %vm232_vm0, %v2489_v0  ;;  %1847 = vmatmul.mubr.msk.f32.gmra.mrb[28].mxu1 %vm232_vm0, %v652_v2 }
  0x59   : > { %1793 = vmatprep.mubr.msk.f32.mxu0 %vm232_vm0, %v2492_v1  ;;  %1849 = vmatprep.mubr.msk.f32.mxu1 %vm232_vm0, %v653_v3 }
  0x5c   : > { %1794 = vmatmul.mubr.msk.f32.gmra.mrb[30].mxu0 %vm232_vm0, %v2505_v4  ;;  %1850 = vmatmul.mubr.msk.f32.gmra.mrb[30].mxu1 %vm232_vm0, %v654_v5 }
  0xf3   : > { %v1750_v9 = vpop.f32.mrb[0].mxu0  ;;  %v1806_v10 = vpop.f32.mrb[0].mxu1 }
  0xf4   : > { %v555_v11 = vsel %vm232_vm0, %v1750_v9, 0.0  ;;  %v395_v14 = vpop.f32.mrb[1].mxu0  ;;  %v977_v15 = vsel %vm232_vm0, %v1806_v10, 0.0  ;;  %v817_v18 = vpop.f32.mrb[1].mxu1 }
  0xf5   : > { %v554_v19 = vsel %vm232_vm0, %v395_v14, 0.0  ;;  %v976_v22 = vsel %vm232_vm0, %v817_v18, 0.0 }
  0xf6   : > { %v556_v23 = vadd.f32 %v555_v11, %v554_v19  ;;  %v978_v26 = vadd.f32 %v977_v15, %v976_v22 }
  0xf7   : > { %v1753_v27 = vpop.f32.mrb[2].mxu0  ;;  %v1809_v30 = vpop.f32.mrb[2].mxu1 }
  0xf8   : > { %v405_v31 = vpop.f32.mrb[3].mxu0  ;;  %v827_v34 = vpop.f32.mrb[3].mxu1  ;;  %v981_v35 = vsel %vm232_vm0, %v1809_v30, 0.0  ;;  %v559_v46 = vsel %vm232_vm0, %v1753_v27, 0.0 }
  0xf9   : > { %v557_v38 = vsel %vm232_vm0, %v405_v31, 0.0  ;;  %v979_v39 = vsel %vm232_vm0, %v827_v34, 0.0 }
  0xfa   : > { %v558_v42 = vadd.f32 %v557_v38, %v556_v23  ;;  %v980_v43 = vadd.f32 %v979_v39, %v978_v26 }
  0xfb   : > { %v1756_v47 = vpop.f32.mrb[4].mxu0  ;;  %v1812_v50 = vpop.f32.mrb[4].mxu1 }
  0xfc   : > { %v415_v51 = vpop.f32.mrb[5].mxu0  ;;  %v560_v54 = vadd.f32 %v559_v46, %v558_v42  ;;  %v837_v55 = vpop.f32.mrb[5].mxu1  ;;  %v982_v58 = vadd.f32 %v981_v35, %v980_v43  ;;  %v985_v59 = vsel %vm232_vm0, %v1812_v50, 0.0  ;;  %v563_v5 = vsel %vm232_vm0, %v1756_v47, 0.0 }
  0xfd   : > { %v561_v62 = vsel %vm232_vm0, %v415_v51, 0.0  ;;  %v983_v63 = vsel %vm232_vm0, %v837_v55, 0.0 }
  0xfe   : > { %v562_v2 = vadd.f32 %v561_v62, %v560_v54  ;;  %v984_v3 = vadd.f32 %v983_v63, %v982_v58 }
  0xff   : > { %v1759_v9 = vpop.f32.mrb[6].mxu0  ;;  %v1815_v10 = vpop.f32.mrb[6].mxu1 }
 0x100   : > { %v425_v11 = vpop.f32.mrb[7].mxu0  ;;  %v564_v14 = vadd.f32 %v563_v5, %v562_v2  ;;  %v847_v15 = vpop.f32.mrb[7].mxu1  ;;  %v986_v18 = vadd.f32 %v985_v59, %v984_v3  ;;  %v989_v19 = vsel %vm232_vm0, %v1815_v10, 0.0  ;;  %v567_v30 = vsel %vm232_vm0, %v1759_v9, 0.0 }
 0x101   : > { %v565_v22 = vsel %vm232_vm0, %v425_v11, 0.0  ;;  %v987_v23 = vsel %vm232_vm0, %v847_v15, 0.0 }
 0x102   : > { %v566_v26 = vadd.f32 %v565_v22, %v564_v14  ;;  %v988_v27 = vadd.f32 %v987_v23, %v986_v18 }
 0x103   : > { %v1762_v31 = vpop.f32.mrb[8].mxu0  ;;  %v1818_v34 = vpop.f32.mrb[8].mxu1 }
 0x104   : > { %v435_v35 = vpop.f32.mrb[9].mxu0  ;;  %v568_v38 = vadd.f32 %v567_v30, %v566_v26  ;;  %v857_v39 = vpop.f32.mrb[9].mxu1  ;;  %v990_v42 = vadd.f32 %v989_v19, %v988_v27  ;;  %v993_v43 = vsel %vm232_vm0, %v1818_v34, 0.0  ;;  %v571_v54 = vsel %vm232_vm0, %v1762_v31, 0.0 }
 0x105   : > { %v569_v46 = vsel %vm232_vm0, %v435_v35, 0.0  ;;  %v991_v47 = vsel %vm232_vm0, %v857_v39, 0.0 }
 0x106   : > { %v570_v50 = vadd.f32 %v569_v46, %v568_v38  ;;  %v992_v51 = vadd.f32 %v991_v47, %v990_v42 }
 0x107   : > { %v1765_v55 = vpop.f32.mrb[10].mxu0  ;;  %v1821_v58 = vpop.f32.mrb[10].mxu1 }
 0x108   : > { %v445_v59 = vpop.f32.mrb[11].mxu0  ;;  %v572_v62 = vadd.f32 %v571_v54, %v570_v50  ;;  %v867_v63 = vpop.f32.mrb[11].mxu1  ;;  %v994_v2 = vadd.f32 %v993_v43, %v992_v51  ;;  %v997_v3 = vsel %vm232_vm0, %v1821_v58, 0.0  ;;  %v575_v14 = vsel %vm232_vm0, %v1765_v55, 0.0 }
 0x109   : > { %v573_v5 = vsel %vm232_vm0, %v445_v59, 0.0  ;;  %v995_v9 = vsel %vm232_vm0, %v867_v63, 0.0 }
 0x10a   : > { %v574_v10 = vadd.f32 %v573_v5, %v572_v62  ;;  %v996_v11 = vadd.f32 %v995_v9, %v994_v2 }
 0x10b   : > { %v1768_v15 = vpop.f32.mrb[12].mxu0  ;;  %v1824_v18 = vpop.f32.mrb[12].mxu1 }
 0x10c   : > { %v455_v19 = vpop.f32.mrb[13].mxu0  ;;  %v576_v22 = vadd.f32 %v575_v14, %v574_v10  ;;  %v877_v23 = vpop.f32.mrb[13].mxu1  ;;  %v998_v26 = vadd.f32 %v997_v3, %v996_v11  ;;  %v1001_v27 = vsel %vm232_vm0, %v1824_v18, 0.0  ;;  %v579_v38 = vsel %vm232_vm0, %v1768_v15, 0.0 }
 0x10d   : > { %v577_v30 = vsel %vm232_vm0, %v455_v19, 0.0  ;;  %v999_v31 = vsel %vm232_vm0, %v877_v23, 0.0 }
 0x10e   : > { %v578_v34 = vadd.f32 %v577_v30, %v576_v22  ;;  %v1000_v35 = vadd.f32 %v999_v31, %v998_v26 }
 0x10f   : > { %v1771_v39 = vpop.f32.mrb[14].mxu0  ;;  %v1827_v42 = vpop.f32.mrb[14].mxu1 }
 0x110   : > { %v465_v43 = vpop.f32.mrb[15].mxu0  ;;  %v580_v46 = vadd.f32 %v579_v38, %v578_v34  ;;  %v887_v47 = vpop.f32.mrb[15].mxu1  ;;  %v1002_v50 = vadd.f32 %v1001_v27, %v1000_v35  ;;  %v1005_v51 = vsel %vm232_vm0, %v1827_v42, 0.0  ;;  %v583_v62 = vsel %vm232_vm0, %v1771_v39, 0.0 }
 0x111   : > { %v581_v54 = vsel %vm232_vm0, %v465_v43, 0.0  ;;  %v1003_v55 = vsel %vm232_vm0, %v887_v47, 0.0 }
 0x112   : > { %v582_v58 = vadd.f32 %v581_v54, %v580_v46  ;;  %v1004_v59 = vadd.f32 %v1003_v55, %v1002_v50 }
 0x113   : > { %v1774_v63 = vpop.f32.mrb[16].mxu0  ;;  %v1830_v2 = vpop.f32.mrb[16].mxu1 }
 0x114   : > { %v475_v3 = vpop.f32.mrb[17].mxu0  ;;  %v584_v5 = vadd.f32 %v583_v62, %v582_v58  ;;  %v897_v9 = vpop.f32.mrb[17].mxu1  ;;  %v1006_v10 = vadd.f32 %v1005_v51, %v1004_v59  ;;  %v1009_v11 = vsel %vm232_vm0, %v1830_v2, 0.0  ;;  %v587_v22 = vsel %vm232_vm0, %v1774_v63, 0.0 }
 0x115   : > { %v585_v14 = vsel %vm232_vm0, %v475_v3, 0.0  ;;  %v1007_v15 = vsel %vm232_vm0, %v897_v9, 0.0 }
 0x116   : > { %v586_v18 = vadd.f32 %v585_v14, %v584_v5  ;;  %v1008_v19 = vadd.f32 %v1007_v15, %v1006_v10 }
 0x117   : > { %v1777_v23 = vpop.f32.mrb[18].mxu0  ;;  %v1833_v26 = vpop.f32.mrb[18].mxu1 }
 0x118   : > { %v485_v27 = vpop.f32.mrb[19].mxu0  ;;  %v588_v30 = vadd.f32 %v587_v22, %v586_v18  ;;  %v907_v31 = vpop.f32.mrb[19].mxu1  ;;  %v1010_v34 = vadd.f32 %v1009_v11, %v1008_v19  ;;  %v1013_v35 = vsel %vm232_vm0, %v1833_v26, 0.0  ;;  %v591_v46 = vsel %vm232_vm0, %v1777_v23, 0.0 }
 0x119   : > { %v589_v38 = vsel %vm232_vm0, %v485_v27, 0.0  ;;  %v1011_v39 = vsel %vm232_vm0, %v907_v31, 0.0 }
 0x11a   : > { %v590_v42 = vadd.f32 %v589_v38, %v588_v30  ;;  %v1012_v43 = vadd.f32 %v1011_v39, %v1010_v34 }
 0x11b   : > { %v1780_v47 = vpop.f32.mrb[20].mxu0  ;;  %v1836_v50 = vpop.f32.mrb[20].mxu1 }
 0x11c   : > { %v495_v51 = vpop.f32.mrb[21].mxu0  ;;  %v592_v54 = vadd.f32 %v591_v46, %v590_v42  ;;  %v917_v55 = vpop.f32.mrb[21].mxu1  ;;  %v1014_v58 = vadd.f32 %v1013_v35, %v1012_v43  ;;  %v1017_v59 = vsel %vm232_vm0, %v1836_v50, 0.0  ;;  %v595_v5 = vsel %vm232_vm0, %v1780_v47, 0.0 }
 0x11d   : > { %v593_v62 = vsel %vm232_vm0, %v495_v51, 0.0  ;;  %v1015_v63 = vsel %vm232_vm0, %v917_v55, 0.0 }
 0x11e   : > { %v594_v2 = vadd.f32 %v593_v62, %v592_v54  ;;  %v1016_v3 = vadd.f32 %v1015_v63, %v1014_v58 }
 0x11f   : > { %v1783_v9 = vpop.f32.mrb[22].mxu0  ;;  %v1839_v10 = vpop.f32.mrb[22].mxu1 }
 0x120   : > { %v505_v11 = vpop.f32.mrb[23].mxu0  ;;  %v596_v14 = vadd.f32 %v595_v5, %v594_v2  ;;  %v927_v15 = vpop.f32.mrb[23].mxu1  ;;  %v1018_v18 = vadd.f32 %v1017_v59, %v1016_v3  ;;  %v1021_v19 = vsel %vm232_vm0, %v1839_v10, 0.0  ;;  %v599_v30 = vsel %vm232_vm0, %v1783_v9, 0.0 }
 0x121   : > { %v597_v22 = vsel %vm232_vm0, %v505_v11, 0.0  ;;  %v1019_v23 = vsel %vm232_vm0, %v927_v15, 0.0 }
 0x122   : > { %v598_v26 = vadd.f32 %v597_v22, %v596_v14  ;;  %v1020_v27 = vadd.f32 %v1019_v23, %v1018_v18 }
 0x123   : > { %v1786_v31 = vpop.f32.mrb[24].mxu0  ;;  %v1842_v34 = vpop.f32.mrb[24].mxu1 }
 0x124   : > { %v515_v35 = vpop.f32.mrb[25].mxu0  ;;  %v600_v38 = vadd.f32 %v599_v30, %v598_v26  ;;  %v937_v39 = vpop.f32.mrb[25].mxu1  ;;  %v1022_v42 = vadd.f32 %v1021_v19, %v1020_v27  ;;  %v1025_v43 = vsel %vm232_vm0, %v1842_v34, 0.0  ;;  %v603_v54 = vsel %vm232_vm0, %v1786_v31, 0.0 }
 0x125   : > { %v601_v46 = vsel %vm232_vm0, %v515_v35, 0.0  ;;  %v1023_v47 = vsel %vm232_vm0, %v937_v39, 0.0 }
 0x126   : > { %v602_v50 = vadd.f32 %v601_v46, %v600_v38  ;;  %v1024_v51 = vadd.f32 %v1023_v47, %v1022_v42 }
 0x127   : > { %v1789_v55 = vpop.f32.mrb[26].mxu0  ;;  %v1845_v58 = vpop.f32.mrb[26].mxu1 }
 0x128   : > { %v525_v59 = vpop.f32.mrb[27].mxu0  ;;  %v604_v62 = vadd.f32 %v603_v54, %v602_v50  ;;  %v947_v63 = vpop.f32.mrb[27].mxu1  ;;  %v1026_v2 = vadd.f32 %v1025_v43, %v1024_v51  ;;  %v1029_v3 = vsel %vm232_vm0, %v1845_v58, 0.0  ;;  %v607_v14 = vsel %vm232_vm0, %v1789_v55, 0.0 }
 0x129   : > { %v605_v5 = vsel %vm232_vm0, %v525_v59, 0.0  ;;  %v1027_v9 = vsel %vm232_vm0, %v947_v63, 0.0 }
 0x12a   : > { %v606_v10 = vadd.f32 %v605_v5, %v604_v62  ;;  %v1028_v11 = vadd.f32 %v1027_v9, %v1026_v2 }
 0x12b   : > { %v1792_v15 = vpop.f32.mrb[28].mxu0  ;;  %v1848_v18 = vpop.f32.mrb[28].mxu1 }
 0x12c   : > { %v535_v19 = vpop.f32.mrb[29].mxu0  ;;  %v608_v22 = vadd.f32 %v607_v14, %v606_v10  ;;  %v957_v23 = vpop.f32.mrb[29].mxu1  ;;  %v1030_v26 = vadd.f32 %v1029_v3, %v1028_v11  ;;  %v1033_v27 = vsel %vm232_vm0, %v1848_v18, 0.0  ;;  %v611_v38 = vsel %vm232_vm0, %v1792_v15, 0.0 }
 0x12d   : > { %v609_v30 = vsel %vm232_vm0, %v535_v19, 0.0  ;;  %v1031_v31 = vsel %vm232_vm0, %v957_v23, 0.0 }
 0x12e   : > { %v610_v34 = vadd.f32 %v609_v30, %v608_v22  ;;  %v1032_v35 = vadd.f32 %v1031_v31, %v1030_v26 }
 0x12f   : > { %v1795_v39 = vpop.f32.mrb[30].mxu0  ;;  %v1851_v42 = vpop.f32.mrb[30].mxu1 }
 0x130   : > { %v545_v43 = vpop.f32.mrb[31].mxu0  ;;  %v612_v46 = vadd.f32 %v611_v38, %v610_v34  ;;  %v967_v47 = vpop.f32.mrb[31].mxu1  ;;  %v1034_v50 = vadd.f32 %v1033_v27, %v1032_v35  ;;  %v1037_v51 = vsel %vm232_vm0, %v1851_v42, 0.0  ;;  %v615_v62 = vsel %vm232_vm0, %v1795_v39, 0.0  ;;  %v1049_v38 = vld [vmem:[%s3077_s2] sm:$0x1] }
 0x131   : > { %v613_v54 = vsel %vm232_vm0, %v545_v43, 0.0  ;;  %v1035_v55 = vsel %vm232_vm0, %v967_v47, 0.0  ;;  %v1055_v34 = vlaneseq }
 0x132   : > { %v614_v58 = vadd.f32 %v613_v54, %v612_v46  ;;  %v1036_v59 = vadd.f32 %v1035_v55, %v1034_v50  ;;  %v1051_v46 = vld [vmem:[%s3078_s3] sm:$0x1] }
 0x133   : > { %v1056_v35 = vshrl.u32 %v1055_v34, 7 }
 0x134   : > { %v616_v63 = vadd.f32 %v615_v62, %v614_v58  ;;  %v1038_v2 = vadd.f32 %v1037_v51, %v1036_v59 }
 0x135   : > { %v1057_v39 = vsub.s32 0, %v1056_v35 }
 0x136   : > { %v617_v3 = vrot.slane %v616_v63, 4  ;;  %v1039_v5 = vrot.slane %v1038_v2, 4 }
 0x138   : > { %v618_v9 = vadd.f32 %v617_v3, %v616_v63  ;;  %v1040_v10 = vadd.f32 %v1039_v5, %v1038_v2 }
 0x13a   : > { %v619_v11 = vrot.slane %v618_v9, 2  ;;  %v1041_v14 = vrot.slane %v1040_v10, 2 }
 0x13c   : > { %v620_v15 = vadd.f32 %v619_v11, %v618_v9  ;;  %v1042_v18 = vadd.f32 %v1041_v14, %v1040_v10 }
 0x13e   : > { %v621_v19 = vrot.slane %v620_v15, 1  ;;  %v1043_v22 = vrot.slane %v1042_v18, 1 }
 0x140   : > { %v622_v23 = vadd.f32 %v621_v19, %v620_v15  ;;  %v1044_v27 = vadd.f32 %v1043_v22, %v1042_v18 }
 0x142   : > { %v1045_v26 = vmul.f32 %v622_v23, %v622_v23 }
 0x144   : > { %v1046_v30 = vsub.f32 %v1044_v27, %v1045_v26 }
 0x146   : > { %v1047_v31 = vadd.f32 1e-05, %v1046_v30 }
 0x148   : > { %1909 = vrsqrt.f32 %v1047_v31 }
 0x152   : > { %v1910_v42 = vpop.eup %1909 }
 0x153   : > { %v1050_v43 = vmul.f32 %v1910_v42, %v1049_v38 }
 0x155   : > { %v1052_v47 = vmul.f32 %v1050_v43, %v622_v23  ;;  %v1058_v50 = vrot.slane %v1050_v43, %v1057_v39 }
 0x157   : > { %v1053_v51 = vsub.f32 %v1051_v46, %v1052_v47  ;;  %v1060_v54 = vmul.f32 %v1058_v50, %v2263_v6  ;;  %v1061_v55 = vmul.f32 %v1058_v50, %v2266_v7  ;;  %v1062_v58 = vmul.f32 %v1058_v50, %v2269_v8 }
 0x158   : > { %v1063_v59 = vmul.f32 %v1058_v50, %v2278_v12  ;;  %v1064_v62 = vmul.f32 %v1058_v50, %v2283_v13  ;;  %v1065_v63 = vmul.f32 %v1058_v50, %v2297_v16  ;;  %v1066_v2 = vmul.f32 %v1058_v50, %v2300_v17 }
 0x159   : > { %v1096_v3 = vrot.slane %v1053_v51, %v1057_v39  ;;  %v1067_v5 = vmul.f32 %v1058_v50, %v2313_v20  ;;  %v1068_v9 = vmul.f32 %v1058_v50, %v2316_v21  ;;  %v1069_v10 = vmul.f32 %v1058_v50, %v2329_v24 }
 0x15a   : > { %v1070_v6 = vmul.f32 %v1058_v50, %v2332_v25  ;;  %v1071_v7 = vmul.f32 %v1058_v50, %v2345_v28  ;;  %v1072_v8 = vmul.f32 %v1058_v50, %v2348_v29  ;;  %v1073_v12 = vmul.f32 %v1058_v50, %v2361_v32 }
 0x15b   : > { %v1074_v13 = vmul.f32 %v1058_v50, %v2364_v33  ;;  %v1075_v16 = vmul.f32 %v1058_v50, %v2377_v36  ;;  %v1076_v17 = vmul.f32 %v1058_v50, %v2380_v37  ;;  %v1077_v20 = vmul.f32 %v1058_v50, %v2393_v40 }
 0x15c   : > { %v1078_v21 = vmul.f32 %v1058_v50, %v2396_v41  ;;  %v1079_v24 = vmul.f32 %v1058_v50, %v2409_v44  ;;  %v1080_v25 = vmul.f32 %v1058_v50, %v2412_v45  ;;  %v1081_v28 = vmul.f32 %v1058_v50, %v2425_v48 }
 0x15d   : > { %v1082_v29 = vmul.f32 %v1058_v50, %v2428_v49  ;;  %v1083_v32 = vmul.f32 %v1058_v50, %v2441_v52  ;;  %v1084_v33 = vmul.f32 %v1058_v50, %v2444_v53  ;;  %v1085_v36 = vmul.f32 %v1058_v50, %v2457_v56 }
 0x15e   : > { %v1086_v37 = vmul.f32 %v1058_v50, %v2460_v57  ;;  %v1087_v40 = vmul.f32 %v1058_v50, %v2473_v60  ;;  %v1088_v41 = vmul.f32 %v1058_v50, %v2476_v61  ;;  %v1089_v44 = vmul.f32 %v1058_v50, %v2489_v0 }
 0x15f   : > { %v1090_v45 = vmul.f32 %v1058_v50, %v2492_v1  ;;  %v1091_v48 = vmul.f32 %v1058_v50, %v2505_v4  ;;  %v2620_v11 = vadd.f32 %v1096_v3, %v1060_v54  ;;  %v2622_v49 = vadd.f32 %v1096_v3, %v1061_v55 }
 0x160   : > { %v2624_v52 = vadd.f32 %v1096_v3, %v1062_v58  ;;  %v2626_v53 = vadd.f32 %v1096_v3, %v1063_v59  ;;  %v2628_v56 = vadd.f32 %v1096_v3, %v1064_v62  ;;  %v2630_v57 = vadd.f32 %v1096_v3, %v1065_v63 }
 0x161   : > { %v2632_v60 = vadd.f32 %v1096_v3, %v1066_v2  ;;  %v2634_v61 = vadd.f32 %v1096_v3, %v1067_v5  ;;  %v2636_v0 = vadd.f32 %v1096_v3, %v1068_v9  ;;  %v2638_v1 = vadd.f32 %v1096_v3, %v1069_v10 }
 0x162   : > { %3096 = vst [vmem:[#allocation5_spill] sm:$0xff] %v2628_v56  ;;  %3097 = vst [vmem:[#allocation6_spill] sm:$0xff] %v2630_v57  ;;  %v2640_v4 = vadd.f32 %v1096_v3, %v1070_v6  ;;  %v2642_v14 = vadd.f32 %v1096_v3, %v1071_v7  ;;  %v2644_v15 = vadd.f32 %v1096_v3, %v1072_v8  ;;  %v1162_v55 = vand.u32 2147483647, %v2620_v11 }
 0x163   : > { %v2646_v18 = vadd.f32 %v1096_v3, %v1073_v12  ;;  %v2648_v19 = vadd.f32 %v1096_v3, %v1074_v13  ;;  %v2650_v22 = vadd.f32 %v1096_v3, %v1075_v16  ;;  %v2652_v23 = vadd.f32 %v1096_v3, %v1076_v17 }
 0x164   : > { %v2654_v26 = vadd.f32 %v1096_v3, %v1077_v20  ;;  %v2656_v27 = vadd.f32 %v1096_v3, %v1078_v21  ;;  %v2658_v30 = vadd.f32 %v1096_v3, %v1079_v24  ;;  %v2660_v31 = vadd.f32 %v1096_v3, %v1080_v25 }
 0x165   : > { %v2662_v34 = vadd.f32 %v1096_v3, %v1081_v28  ;;  %v2664_v35 = vadd.f32 %v1096_v3, %v1082_v29  ;;  %v2666_v38 = vadd.f32 %v1096_v3, %v1083_v32  ;;  %v2668_v39 = vadd.f32 %v1096_v3, %v1084_v33 }
 0x166   : > { %v2670_v42 = vadd.f32 %v1096_v3, %v1085_v36  ;;  %v2672_v43 = vadd.f32 %v1096_v3, %v1086_v37  ;;  %v2674_v46 = vadd.f32 %v1096_v3, %v1087_v40  ;;  %v2676_v47 = vadd.f32 %v1096_v3, %v1088_v41 }
 0x167   : > { %v2678_v50 = vadd.f32 %v1096_v3, %v1089_v44  ;;  %v2680_v51 = vadd.f32 %v1096_v3, %v1090_v45  ;;  %v2682_v54 = vadd.f32 %v1096_v3, %v1091_v48  ;;  %v1163_v58 = vand.u32 2147483647, %v2622_v49 }
 0x168   : > { %3098 = vst [vmem:[#allocation7_spill] sm:$0xff] %v2672_v43  ;;  %3099 = vst [vmem:[#allocation8_spill] sm:$0xff] %v2674_v46  ;;  %v1164_v59 = vand.u32 2147483647, %v2624_v52  ;;  %v1165_v62 = vand.u32 2147483647, %v2626_v53 }
 0x169   : > { %3100 = vst [vmem:[#allocation9_spill] sm:$0xff] %v2676_v47  ;;  %3101 = vst [vmem:[#allocation10_spill] sm:$0xff] %v2678_v50  ;;  %v1166_v63 = vand.u32 2147483647, %v2628_v56  ;;  %v1167_v2 = vand.u32 2147483647, %v2630_v57 }
 0x16a   : > { %3102 = vst [vmem:[#allocation11_spill] sm:$0xff] %v2680_v51  ;;  %3103 = vst [vmem:[#allocation12_spill] sm:$0xff] %v2682_v54  ;;  %v1168_v5 = vand.u32 2147483647, %v2632_v60  ;;  %v1194_v9 = vsub.f32 0.0, %v1162_v55  ;;  %v1195_v10 = vsub.f32 0.0, %v1163_v58 }
 0x16b   : > { %v1196_v6 = vsub.f32 0.0, %v1164_v59  ;;  %v1169_v3 = vand.u32 2147483647, %v2634_v61  ;;  %v1197_v7 = vsub.f32 0.0, %v1165_v62  ;;  %v1170_v8 = vand.u32 2147483647, %v2636_v0 }
 0x16c   : > { %v1198_v12 = vsub.f32 0.0, %v1166_v63  ;;  %v1171_v13 = vand.u32 2147483647, %v2638_v1  ;;  %v1172_v16 = vand.u32 2147483647, %v2640_v4  ;;  %v1199_v17 = vsub.f32 0.0, %v1167_v2 }
 0x16d   : > { %v1200_v20 = vsub.f32 0.0, %v1168_v5  ;;  %v1226_v21 = vmul.f32 1.442695, %v1194_v9  ;;  %v1228_v24 = vmul.f32 1.442695, %v1195_v10  ;;  %v1201_v29 = vsub.f32 0.0, %v1169_v3 }
 0x16e   : > { %v1230_v25 = vmul.f32 1.442695, %v1196_v6  ;;  %v1173_v28 = vand.u32 2147483647, %v2642_v14  ;;  %v1232_v32 = vmul.f32 1.442695, %v1197_v7 }
 0x16f   : > { %v1174_v33 = vand.u32 2147483647, %v2644_v15  ;;  %v1202_v36 = vsub.f32 0.0, %v1170_v8  ;;  %1911 = vpow2.f32 %v1226_v21  ;;  %v1234_v37 = vmul.f32 1.442695, %v1198_v12 }
 0x170   : > { %v1175_v40 = vand.u32 2147483647, %v2646_v18  ;;  %v1203_v41 = vsub.f32 0.0, %v1171_v13  ;;  %1913 = vpow2.f32 %v1228_v24  ;;  %v1236_v44 = vmul.f32 1.442695, %v1199_v17 }
 0x171   : > { %v1176_v45 = vand.u32 2147483647, %v2648_v19  ;;  %v1204_v48 = vsub.f32 0.0, %v1172_v16  ;;  %1915 = vpow2.f32 %v1230_v25  ;;  %v1238_v55 = vmul.f32 1.442695, %v1200_v20 }
 0x172   : > { %v1177_v58 = vand.u32 2147483647, %v2650_v22  ;;  %v1205_v59 = vsub.f32 0.0, %v1173_v28  ;;  %1917 = vpow2.f32 %v1232_v32  ;;  %v1240_v62 = vmul.f32 1.442695, %v1201_v29 }
 0x173   : > { %v1178_v63 = vand.u32 2147483647, %v2652_v23  ;;  %v1206_v2 = vsub.f32 0.0, %v1174_v33  ;;  %1919 = vpow2.f32 %v1234_v37  ;;  %v1242_v5 = vmul.f32 1.442695, %v1202_v36 }
 0x174   : > { %v1179_v9 = vand.u32 2147483647, %v2654_v26  ;;  %v1207_v10 = vsub.f32 0.0, %v1175_v40  ;;  %1921 = vpow2.f32 %v1236_v44  ;;  %v1244_v6 = vmul.f32 1.442695, %v1203_v41 }
 0x175   : > { %v1180_v3 = vand.u32 2147483647, %v2656_v27  ;;  %v1208_v7 = vsub.f32 0.0, %v1176_v45  ;;  %1923 = vpow2.f32 %v1238_v55  ;;  %v1246_v8 = vmul.f32 1.442695, %v1204_v48 }
 0x176   : > { %v1181_v12 = vand.u32 2147483647, %v2658_v30  ;;  %v1209_v13 = vsub.f32 0.0, %v1177_v58  ;;  %1925 = vpow2.f32 %v1240_v62  ;;  %v1248_v16 = vmul.f32 1.442695, %v1205_v59 }
 0x177   : > { %v1182_v17 = vand.u32 2147483647, %v2660_v31  ;;  %v1210_v20 = vsub.f32 0.0, %v1178_v63  ;;  %1927 = vpow2.f32 %v1242_v5  ;;  %v1250_v21 = vmul.f32 1.442695, %v1206_v2 }
 0x178   : > { %v1183_v24 = vand.u32 2147483647, %v2662_v34  ;;  %v1211_v25 = vsub.f32 0.0, %v1179_v9  ;;  %1929 = vpow2.f32 %v1244_v6  ;;  %v1252_v28 = vmul.f32 1.442695, %v1207_v10 }
 0x179   : > { %v2706_v29 = vpop.eup %1911  ;;  %v1184_v32 = vand.u32 2147483647, %v2664_v35  ;;  %v1212_v33 = vsub.f32 0.0, %v1180_v3  ;;  %1931 = vpow2.f32 %v1246_v8  ;;  %v1254_v36 = vmul.f32 1.442695, %v1208_v7 }
 0x17a   : > { %v2709_v37 = vpop.eup %1913  ;;  %v1185_v40 = vand.u32 2147483647, %v2666_v38  ;;  %v1213_v41 = vsub.f32 0.0, %v1181_v12  ;;  %1933 = vpow2.f32 %v1248_v16  ;;  %v1256_v44 = vmul.f32 1.442695, %v1209_v13 }
 0x17b   : > { %v2712_v45 = vpop.eup %1915  ;;  %v1186_v48 = vand.u32 2147483647, %v2668_v39  ;;  %v1214_v55 = vsub.f32 0.0, %v1182_v17  ;;  %1935 = vpow2.f32 %v1250_v21  ;;  %v1258_v58 = vmul.f32 1.442695, %v1210_v20 }
 0x17c   : > { %v2715_v59 = vpop.eup %1917  ;;  %v1187_v62 = vand.u32 2147483647, %v2670_v42  ;;  %v1215_v63 = vsub.f32 0.0, %v1183_v24  ;;  %1937 = vpow2.f32 %v1252_v28  ;;  %v1260_v2 = vmul.f32 1.442695, %v1211_v25 }
 0x17d   : > { %v2718_v5 = vpop.eup %1919  ;;  %v1188_v9 = vand.u32 2147483647, %v2672_v43  ;;  %v1216_v10 = vsub.f32 0.0, %v1184_v32  ;;  %1939 = vpow2.f32 %v1254_v36  ;;  %v1262_v6 = vmul.f32 1.442695, %v1212_v33 }
 0x17e   : > { %v2721_v3 = vpop.eup %1921  ;;  %v1189_v7 = vand.u32 2147483647, %v2674_v46  ;;  %v1217_v8 = vsub.f32 0.0, %v1185_v40  ;;  %1941 = vpow2.f32 %v1256_v44  ;;  %v1264_v12 = vmul.f32 1.442695, %v1213_v41 }
 0x17f   : > { %v2724_v13 = vpop.eup %1923  ;;  %v1190_v16 = vand.u32 2147483647, %v2676_v47  ;;  %v1218_v17 = vsub.f32 0.0, %v1186_v48  ;;  %1943 = vpow2.f32 %v1258_v58  ;;  %v1266_v20 = vmul.f32 1.442695, %v1214_v55 }
 0x180   : > { %v2727_v21 = vpop.eup %1925  ;;  %v1191_v24 = vand.u32 2147483647, %v2678_v50  ;;  %v1219_v25 = vsub.f32 0.0, %v1187_v62  ;;  %1945 = vpow2.f32 %v1260_v2  ;;  %v1268_v28 = vmul.f32 1.442695, %v1215_v63 }
 0x181   : > { %v1928_v32 = vpop.eup %1927  ;;  %v1192_v33 = vand.u32 2147483647, %v2680_v51  ;;  %v1220_v36 = vsub.f32 0.0, %v1188_v9  ;;  %1947 = vpow2.f32 %v1262_v6  ;;  %v1270_v40 = vmul.f32 1.442695, %v1216_v10 }
 0x182   : > { %v1930_v41 = vpop.eup %1929  ;;  %v1193_v44 = vand.u32 2147483647, %v2682_v54  ;;  %v1221_v47 = vsub.f32 0.0, %v1189_v7  ;;  %1949 = vpow2.f32 %v1264_v12  ;;  %v1272_v48 = vmul.f32 1.442695, %v1217_v8 }
 0x183   : > { %v1932_v55 = vpop.eup %1931  ;;  %v1222_v58 = vsub.f32 0.0, %v1190_v16  ;;  %1951 = vpow2.f32 %v1266_v20  ;;  %v1274_v46 = vmul.f32 1.442695, %v1218_v17  ;;  %v1223_v62 = vsub.f32 0.0, %v1191_v24 }
 0x184   : > { %v1934_v50 = vpop.eup %1933  ;;  %1953 = vpow2.f32 %v1268_v28  ;;  %v1276_v63 = vmul.f32 1.442695, %v1219_v25  ;;  %v1224_v43 = vsub.f32 0.0, %v1192_v33  ;;  %v1278_v9 = vmul.f32 1.442695, %v1220_v36 }
 0x185   : > { %v1936_v2 = vpop.eup %1935  ;;  %1955 = vpow2.f32 %v1270_v40  ;;  %v1225_v10 = vsub.f32 0.0, %v1193_v44  ;;  %v1280_v51 = vmul.f32 1.442695, %v1221_v47  ;;  %v1282_v7 = vmul.f32 1.442695, %v1222_v58 }
 0x186   : > { %v1938_v6 = vpop.eup %1937  ;;  %1957 = vpow2.f32 %v1272_v48  ;;  %v1284_v12 = vmul.f32 1.442695, %v1223_v62  ;;  %v1286_v17 = vmul.f32 1.442695, %v1224_v43  ;;  %v1290_v28 = vadd.f32 1.0, %v2706_v29 }
 0x187   : > { %v1940_v54 = vpop.eup %1939  ;;  %1959 = vpow2.f32 %v1274_v46  ;;  %v1288_v24 = vmul.f32 1.442695, %v1225_v10  ;;  %v1291_v47 = vadd.f32 1.0, %v2709_v37  ;;  %v1292_v46 = vadd.f32 1.0, %v2712_v45 }
 0x188   : > { %v1942_v8 = vpop.eup %1941  ;;  %1961 = vpow2.f32 %v1276_v63  ;;  %v1293_v44 = vadd.f32 1.0, %v2715_v59  ;;  %v1295_v58 = vadd.f32 1.0, %v2721_v3  ;;  %v1296_v62 = vadd.f32 1.0, %v2724_v13 }
 0x189   : > { %v1944_v16 = vpop.eup %1943  ;;  %1963 = vpow2.f32 %v1278_v9  ;;  %v1297_v63 = vadd.f32 1.0, %v2727_v21  ;;  %v1298_v9 = vadd.f32 1.0, %v1928_v32  ;;  %v1300_v3 = vadd.f32 1.0, %v1932_v55 }
 0x18a   : > { %v1946_v20 = vpop.eup %1945  ;;  %1965 = vpow2.f32 %v1280_v51  ;;  %v1294_v51 = vadd.f32 1.0, %v2718_v5  ;;  %v1299_v5 = vadd.f32 1.0, %v1930_v41  ;;  %v1301_v13 = vadd.f32 1.0, %v1934_v50 }
 0x18b   : > { %v1948_v25 = vpop.eup %1947  ;;  %1967 = vpow2.f32 %v1282_v7  ;;  %v1302_v21 = vadd.f32 1.0, %v1936_v2  ;;  %v1303_v32 = vadd.f32 1.0, %v1938_v6  ;;  %v1307_v50 = vadd.f32 1.0, %v1946_v20 }
 0x18c   : > { %v1950_v33 = vpop.eup %1949  ;;  %1969 = vpow2.f32 %v1284_v12  ;;  %v1130_v20 = vmax.f32 %v2620_v11, 0.0 }
 0x18d   : > { %v1952_v36 = vpop.eup %1951  ;;  %1971 = vpow2.f32 %v1286_v17 }
 0x18e   : > { %v1954_v40 = vpop.eup %1953  ;;  %1973 = vpow2.f32 %v1288_v24 }
 0x18f   : > { %v1956_v43 = vpop.eup %1955  ;;  %1975 = vlog2.f32 %v1290_v28  ;;  %v1304_v28 = vadd.f32 1.0, %v1940_v54  ;;  %v1310_v54 = vadd.f32 1.0, %v1952_v36 }
 0x190   : > { %v1958_v48 = vpop.eup %1957  ;;  %1977 = vlog2.f32 %v1291_v47  ;;  %v1305_v47 = vadd.f32 1.0, %v1942_v8  ;;  %v1311_v8 = vadd.f32 1.0, %v1954_v40  ;;  %v1134_v40 = vmax.f32 %v2628_v56, 0.0 }
 0x191   : > { %v1960_v29 = vpop.eup %1959  ;;  %1979 = vlog2.f32 %v1292_v46  ;;  %v1306_v46 = vadd.f32 1.0, %v1944_v16 }
 0x192   : > { %v1962_v37 = vpop.eup %1961  ;;  %1981 = vlog2.f32 %v1293_v44 }
 0x193   : > { %v2740_v45 = vpop.eup %1963  ;;  %1983 = vlog2.f32 %v1294_v51 }
 0x194   : > { %v2742_v59 = vpop.eup %1965  ;;  %1985 = vlog2.f32 %v1295_v58  ;;  %v1308_v58 = vadd.f32 1.0, %v1948_v25 }
 0x195   : > { %v2744_v10 = vpop.eup %1967  ;;  %1987 = vlog2.f32 %v1296_v62  ;;  %v1309_v62 = vadd.f32 1.0, %v1950_v33  ;;  %v1132_v33 = vmax.f32 %v2624_v52, 0.0 }
 0x196   : > { %v2746_v7 = vpop.eup %1969  ;;  %1989 = vlog2.f32 %v1297_v63 }
 0x197   : > { %v2748_v12 = vpop.eup %1971  ;;  %1991 = vlog2.f32 %v1298_v9  ;;  %v1312_v9 = vadd.f32 1.0, %v1956_v43  ;;  %v1135_v43 = vmax.f32 %v2630_v57, 0.0  ;;  %v1317_v57 = vadd.f32 1.0, %v2742_v59 }
 0x198   : > { %v2750_v17 = vpop.eup %1973  ;;  %1993 = vlog2.f32 %v1299_v5  ;;  %v1131_v5 = vmax.f32 %v2622_v49, 0.0 }
 0x199   : > { %v1976_v24 = vpop.eup %1975  ;;  %1995 = vlog2.f32 %v1300_v3  ;;  %v1313_v3 = vadd.f32 1.0, %v1958_v48  ;;  %v1318_v48 = vadd.f32 1.0, %v2744_v10 }
 0x19a   : > { %v1978_v41 = vpop.eup %1977  ;;  %1997 = vlog2.f32 %v1301_v13  ;;  %v1133_v13 = vmax.f32 %v2626_v53, 0.0 }
 0x19b   : > { %v1980_v55 = vpop.eup %1979  ;;  %1999 = vlog2.f32 %v1302_v21  ;;  %v1314_v21 = vadd.f32 1.0, %v1960_v29  ;;  %v1325_v29 = vmul.f32 0.6931472, %v1978_v41 }
 0x19c   : > { %v1982_v44 = vpop.eup %1981  ;;  %2001 = vlog2.f32 %v1303_v32  ;;  %v1327_v56 = vmul.f32 0.6931472, %v1980_v55 }
 0x19d   : > { %v1984_v51 = vpop.eup %1983  ;;  %2003 = vlog2.f32 %v1304_v28  ;;  %v1323_v28 = vmul.f32 0.6931472, %v1976_v24  ;;  %v1321_v24 = vadd.f32 1.0, %v2750_v17 }
 0x19e   : > { %v2752_v2 = vpop.eup %1985  ;;  %2005 = vlog2.f32 %v1305_v47  ;;  %v1315_v47 = vadd.f32 1.0, %v1962_v37  ;;  %v1331_v41 = vmul.f32 0.6931472, %v1984_v51 }
 0x19f   : > { %v2754_v6 = vpop.eup %1987  ;;  %2007 = vlog2.f32 %v1306_v46  ;;  %v1333_v55 = vmul.f32 0.6931472, %v2752_v2  ;;  %v3114_v2 = vmax.f32 %v2646_v18, 0.0 }
 0x1a0   : > { %v2756_v63 = vpop.eup %1989  ;;  %2009 = vlog2.f32 %v1307_v50 }
 0x1a1   : > { %v2758_v16 = vpop.eup %1991  ;;  %2011 = vlog2.f32 %v1308_v58  ;;  %v1316_v58 = vadd.f32 1.0, %v2740_v45 }
 0x1a2   : > { %v2761_v25 = vpop.eup %1993  ;;  %2013 = vlog2.f32 %v1309_v62 }
 0x1a3   : > { %v2765_v36 = vpop.eup %1995  ;;  %2015 = vlog2.f32 %v1310_v54 }
 0x1a4   : > { %v2769_v32 = vpop.eup %1997  ;;  %2017 = vlog2.f32 %v1311_v8 }
 0x1a5   : > { %v2773_v46 = vpop.eup %1999  ;;  %2019 = vlog2.f32 %v1312_v9  ;;  %v1319_v9 = vadd.f32 1.0, %v2746_v7 }
 0x1a6   : > { %v2778_v62 = vpop.eup %2001  ;;  %2021 = vlog2.f32 %v1313_v3  ;;  %v1320_v3 = vadd.f32 1.0, %v2748_v12  ;;  %v1146_v12 = vmax.f32 %v2652_v23, 0.0 }
 0x1a7   : > { %v2783_v37 = vpop.eup %2003  ;;  %2023 = vlog2.f32 %v1314_v21  ;;  %v1329_v21 = vmul.f32 0.6931472, %v1982_v44  ;;  %v1388_v44 = vadd.f32 %v1327_v56, %v1132_v33  ;;  %v1391_v33 = vadd.f32 %v1333_v55, %v1135_v43  ;;  %v3113_v56 = vld [vmem:[#allocation9_spill] sm:$0xff] }
 0x1a8   : > { %v2787_v50 = vpop.eup %2005  ;;  %2025 = vlog2.f32 %v1315_v47  ;;  %v1386_v47 = vadd.f32 %v1323_v28, %v1130_v20  ;;  %v1337_v20 = vmul.f32 0.6931472, %v2756_v63  ;;  %v1347_v55 = vmul.f32 0.6931472, %v2773_v46 }
 0x1a9   : > { %v2791_v54 = vpop.eup %2007  ;;  %2027 = vlog2.f32 %v1316_v58  ;;  %v1387_v58 = vadd.f32 %v1325_v29, %v1131_v5  ;;  %v1389_v28 = vadd.f32 %v1329_v21, %v1133_v13  ;;  %v1339_v5 = vmul.f32 0.6931472, %v2758_v16 }
 0x1aa   : > { %v2795_v8 = vpop.eup %2009  ;;  %2029 = vlog2.f32 %v1317_v57  ;;  %v1335_v57 = vmul.f32 0.6931472, %v2754_v6  ;;  %v1390_v29 = vadd.f32 %v1331_v41, %v1134_v40  ;;  %v1341_v6 = vmul.f32 0.6931472, %v2761_v25 }
 0x1ab   : > { %v2799_v45 = vpop.eup %2011  ;;  %2031 = vlog2.f32 %v1318_v48  ;;  %v1345_v41 = vmul.f32 0.6931472, %v2769_v32  ;;  %v3105_v25 = vmax.f32 %v2634_v61, 0.0  ;;  %v1351_v46 = vmul.f32 0.6931472, %v2783_v37  ;;  %v3111_v37 = vld [vmem:[#allocation8_spill] sm:$0xff] }
 0x1ac   : > { %v2802_v59 = vpop.eup %2013  ;;  %2033 = vlog2.f32 %v1319_v9  ;;  %v3108_v21 = vmax.f32 %v2640_v4, 0.0  ;;  %v1359_v32 = vmul.f32 0.6931472, %v2799_v45 }
 0x1ad   : > { %v2806_v10 = vpop.eup %2015  ;;  %2035 = vlog2.f32 %v1320_v3  ;;  %v1343_v3 = vmul.f32 0.6931472, %v2765_v36  ;;  %v1393_v43 = vadd.f32 %v1337_v20, %v3105_v25  ;;  %v3107_v20 = vmax.f32 %v2638_v1, 0.0 }
 0x1ae   : > { %v2810_v7 = vpop.eup %2017  ;;  %2037 = vlog2.f32 %v1321_v24  ;;  %v3104_v24 = vmax.f32 %v2632_v60, 0.0 }
 0x1af   : > { %v2814_v48 = vpop.eup %2019  ;;  %2039 = vtanh.f32 %v1386_v47 }
 0x1b0   : > { %v2818_v9 = vpop.eup %2021  ;;  %2041 = vtanh.f32 %v1387_v58  ;;  %v1392_v16 = vadd.f32 %v1335_v57, %v3104_v24  ;;  %v3106_v58 = vmax.f32 %v2636_v0, 0.0  ;;  %v1349_v24 = vmul.f32 0.6931472, %v2778_v62  ;;  %v3109_v62 = vld [vmem:[#allocation7_spill] sm:$0xff] }
 0x1b1   : > { %v2822_v63 = vpop.eup %2023  ;;  %2043 = vtanh.f32 %v1388_v44 }
 0x1b2   : > { %v2828_v40 = vpop.eup %2025  ;;  %2045 = vtanh.f32 %v1389_v28  ;;  %v1394_v57 = vadd.f32 %v1339_v5, %v3106_v58  ;;  %v1395_v28 = vadd.f32 %v1341_v6, %v3107_v20  ;;  %v1396_v5 = vadd.f32 %v1343_v3, %v3108_v21 }
 0x1b3   : > { %v2834_v47 = vpop.eup %2027  ;;  %2047 = vtanh.f32 %v1390_v29  ;;  %v1353_v6 = vmul.f32 0.6931472, %v2787_v50  ;;  %v1355_v3 = vmul.f32 0.6931472, %v2791_v54  ;;  %v1158_v58 = vmax.f32 %v3113_v56, 0.0 }
 0x1b4   : > { %v2841_v44 = vpop.eup %2029  ;;  %2049 = vtanh.f32 %v1391_v33  ;;  %v3110_v33 = vmax.f32 %v2642_v14, 0.0  ;;  %v1357_v50 = vmul.f32 0.6931472, %v2795_v8  ;;  %v3116_v54 = vmax.f32 %v2648_v19, 0.0 }
 0x1b5   : > { %v2847_v25 = vpop.eup %2031  ;;  %2051 = vtanh.f32 %v1392_v16  ;;  %v3112_v16 = vmax.f32 %v2644_v15, 0.0  ;;  %v1402_v45 = vadd.f32 %v1355_v3, %v1146_v12  ;;  %v3120_v3 = vmax.f32 %v2658_v30, 0.0 }
 0x1b6   : > { %v2853_v29 = vpop.eup %2033  ;;  %v1397_v20 = vadd.f32 %v1345_v41, %v3110_v33  ;;  %2053 = vtanh.f32 %v1393_v43  ;;  %v1399_v41 = vadd.f32 %v1349_v24, %v3114_v2  ;;  %v3115_v33 = vld [vmem:[#allocation10_spill] sm:$0xff]  ;;  %v1400_v17 = vadd.f32 %v1351_v46, %v3116_v54 }
 0x1b7   : > { %v2863_v36 = vpop.eup %2035  ;;  %v1398_v21 = vadd.f32 %v1347_v55, %v3112_v16  ;;  %2055 = vtanh.f32 %v1394_v57  ;;  %v1361_v57 = vmul.f32 0.6931472, %v2802_v59  ;;  %v3117_v16 = vmax.f32 %v2650_v22, 0.0 }
 0x1b8   : > { %v2869_v13 = vpop.eup %2037  ;;  %2057 = vtanh.f32 %v1395_v28  ;;  %v1363_v28 = vmul.f32 0.6931472, %v2806_v10  ;;  %v1365_v54 = vmul.f32 0.6931472, %v2810_v7  ;;  %v3118_v59 = vmax.f32 %v2654_v26, 0.0 }
 0x1b9   : > { %v2040_v43 = vpop.eup %2039  ;;  %2059 = vtanh.f32 %v1396_v5  ;;  %v1401_v8 = vadd.f32 %v1353_v6, %v3117_v16  ;;  %v1367_v10 = vmul.f32 0.6931472, %v2814_v48  ;;  %v3124_v16 = vmax.f32 %v2662_v34, 0.0 }
 0x1ba   : > { %v2042_v55 = vpop.eup %2041  ;;  %2061 = vtanh.f32 %v1397_v20  ;;  %v1450_v2 = vmul.f32 %v2040_v43, %v2620_v11  ;;  %v1403_v51 = vadd.f32 %v1357_v50, %v3118_v59  ;;  %v1369_v20 = vmul.f32 0.6931472, %v2818_v9  ;;  %v3121_v50 = vld [vmem:[#allocation5_spill] sm:$0xff]  ;;  %v3123_v43 = vld [vmem:[#allocation6_spill] sm:$0xff] }
 0x1bb   : > { %v2044_v24 = vpop.eup %2043  ;;  %2063 = vtanh.f32 %v1398_v21  ;;  %v1451_v46 = vmul.f32 %v2042_v55, %v2622_v49  ;;  %v3119_v49 = vmax.f32 %v2656_v27, 0.0  ;;  %v1405_v21 = vadd.f32 %v1361_v57, %v3120_v3 }
 0x1bc   : > { %v2046_v5 = vpop.eup %2045  ;;  %2065 = vtanh.f32 %v1399_v41  ;;  %v1452_v6 = vmul.f32 %v2044_v24, %v2624_v52  ;;  %1482 = vst.msk [vmem:[%s2892_s29] sm:$0xff] %vm232_vm0, %v1450_v2  ;;  %v1373_v57 = vmul.f32 0.6931472, %v2828_v40  ;;  %v1375_v24 = vmul.f32 0.6931472, %v2834_v47 }
 0x1bd   : > { %v2048_v11 = vpop.eup %2047  ;;  %v1404_v7 = vadd.f32 %v1359_v32, %v3119_v49  ;;  %2067 = vtanh.f32 %v1400_v17  ;;  %v1453_v12 = vmul.f32 %v2046_v5, %v2626_v53  ;;  %1483 = vst.msk [vmem:[%s2892_s29 + $0x8] sm:$0xff] %vm232_vm0, %v1451_v46  ;;  %v1371_v32 = vmul.f32 0.6931472, %v2822_v63 }
 0x1be   : > { %v2050_v52 = vpop.eup %2049  ;;  %2069 = vtanh.f32 %v1401_v8  ;;  %v1454_v41 = vmul.f32 %v2048_v11, %v3121_v50  ;;  %1484 = vst.msk [vmem:[%s2892_s29 + $0x10] sm:$0xff] %vm232_vm0, %v1452_v6  ;;  %v3122_v17 = vmax.f32 %v2660_v31, 0.0  ;;  %v1407_v8 = vadd.f32 %v1365_v54, %v3124_v16 }
 0x1bf   : > { %v2052_v48 = vpop.eup %2051  ;;  %2071 = vtanh.f32 %v1402_v45  ;;  %v1455_v55 = vmul.f32 %v2050_v52, %v3123_v43  ;;  %1485 = vst.msk [vmem:[%s2892_s29 + $0x18] sm:$0xff] %vm232_vm0, %v1453_v12  ;;  %v1377_v5 = vmul.f32 0.6931472, %v2841_v44  ;;  %v1379_v59 = vmul.f32 0.6931472, %v2847_v25 }
 0x1c0   : > { %v1406_v53 = vadd.f32 %v1363_v28, %v3122_v17  ;;  %v2054_v9 = vpop.eup %2053  ;;  %2073 = vtanh.f32 %v1403_v51  ;;  %v1456_v2 = vmul.f32 %v2052_v48, %v2632_v60  ;;  %1486 = vst.msk [vmem:[%s2892_s29 + $0x20] sm:$0xff] %vm232_vm0, %v1454_v41  ;;  %v3125_v28 = vmax.f32 %v2664_v35, 0.0  ;;  %v3131_v41 = vld [vmem:[#allocation11_spill] sm:$0xff]  ;;  %v3132_v17 = vld [vmem:[#allocation12_spill] sm:$0xff] }
 0x1c1   : > { %v2056_v63 = vpop.eup %2055  ;;  %2075 = vtanh.f32 %v1404_v7  ;;  %v1457_v46 = vmul.f32 %v2054_v9, %v2634_v61  ;;  %1487 = vst.msk [vmem:[%s2892_s29 + $0x28] sm:$0xff] %vm232_vm0, %v1455_v55  ;;  %v3126_v51 = vmax.f32 %v2666_v38, 0.0  ;;  %v3127_v6 = vmax.f32 %v2668_v39, 0.0 }
 0x1c2   : > { %v1408_v45 = vadd.f32 %v1367_v10, %v3125_v28  ;;  %v2058_v40 = vpop.eup %2057  ;;  %2077 = vtanh.f32 %v1405_v21  ;;  %v1458_v54 = vmul.f32 %v2056_v63, %v2636_v0  ;;  %1488 = vst.msk [vmem:[%s2892_s29 + $0x30] sm:$0xff] %vm232_vm0, %v1456_v2  ;;  %v1381_v10 = vmul.f32 0.6931472, %v2853_v29 }
 0x1c3   : > { %v1409_v60 = vadd.f32 %v1369_v20, %v3126_v51  ;;  %v2060_v47 = vpop.eup %2059  ;;  %v1410_v61 = vadd.f32 %v1371_v32, %v3127_v6  ;;  %2079 = vtanh.f32 %v1406_v53  ;;  %v1459_v11 = vmul.f32 %v2058_v40, %v2638_v1  ;;  %1489 = vst.msk [vmem:[%s2892_s29 + $0x38] sm:$0xff] %vm232_vm0, %v1457_v46 }
 0x1c4   : > { %v2062_v44 = vpop.eup %2061  ;;  %v3128_v49 = vmax.f32 %v2670_v42, 0.0  ;;  %2081 = vtanh.f32 %v1407_v8  ;;  %v1460_v7 = vmul.f32 %v2060_v47, %v2640_v4  ;;  %1490 = vst.msk [vmem:[%s2892_s29 + $0x40] sm:$0xff] %vm232_vm0, %v1458_v54  ;;  %v1383_v12 = vmul.f32 0.6931472, %v2863_v36 }
 0x1c5   : > { %v2064_v25 = vpop.eup %2063  ;;  %v3129_v52 = vmax.f32 %v3109_v62, 0.0  ;;  %2083 = vtanh.f32 %v1408_v45  ;;  %v1461_v20 = vmul.f32 %v2062_v44, %v2642_v14  ;;  %1491 = vst.msk [vmem:[%s2892_s29 + $0x48] sm:$0xff] %vm232_vm0, %v1459_v11  ;;  %v1385_v3 = vmul.f32 0.6931472, %v2869_v13 }
 0x1c6   : > { %v1411_v0 = vadd.f32 %v1373_v57, %v3128_v49  ;;  %v2066_v29 = vpop.eup %2065  ;;  %v3130_v21 = vmax.f32 %v3111_v37, 0.0  ;;  %2085 = vtanh.f32 %v1409_v60  ;;  %v1462_v50 = vmul.f32 %v2064_v25, %v2644_v15  ;;  %1492 = vst.msk [vmem:[%s2892_s29 + $0x50] sm:$0xff] %vm232_vm0, %v1460_v7 }
 0x1c7   : > { %v1412_v1 = vadd.f32 %v1375_v24, %v3129_v52  ;;  %v2068_v36 = vpop.eup %2067  ;;  %v1160_v48 = vmax.f32 %v3131_v41, 0.0  ;;  %v1414_v14 = vadd.f32 %v1379_v59, %v1158_v58  ;;  %2087 = vtanh.f32 %v1410_v61  ;;  %1493 = vst.msk [vmem:[%s2892_s29 + $0x58] sm:$0xff] %vm232_vm0, %v1461_v20 }
 0x1c8   : > { %v1413_v4 = vadd.f32 %v1377_v5, %v3130_v21  ;;  %v1463_v32 = vmul.f32 %v2066_v29, %v2646_v18  ;;  %v2070_v13 = vpop.eup %2069  ;;  %v1161_v53 = vmax.f32 %v3132_v17, 0.0  ;;  %v3133_v15 = vmax.f32 %v3115_v33, 0.0  ;;  %1494 = vst.msk [vmem:[%s2892_s29 + $0x60] sm:$0xff] %vm232_vm0, %v1462_v50 }
 0x1c9   : > { %2089 = vtanh.f32 %v1411_v0  ;;  %v1464_v55 = vmul.f32 %v2068_v36, %v2648_v19  ;;  %v2072_v9 = vpop.eup %2071  ;;  %v1416_v58 = vadd.f32 %v1383_v12, %v1160_v48  ;;  %v1465_v18 = vmul.f32 %v2070_v13, %v2650_v22 }
 0x1ca   : > { %v1415_v43 = vadd.f32 %v1381_v10, %v3133_v15  ;;  %2091 = vtanh.f32 %v1412_v1  ;;  %1495 = vst.msk [vmem:[%s2892_s29 + $0x68] sm:$0xff] %vm232_vm0, %v1463_v32  ;;  %v2074_v57 = vpop.eup %2073  ;;  %v1417_v16 = vadd.f32 %v1385_v3, %v1161_v53  ;;  %v1466_v8 = vmul.f32 %v2072_v9, %v2652_v23 }
 0x1cb   : > { %2093 = vtanh.f32 %v1413_v4  ;;  %1496 = vst.msk [vmem:[%s2892_s29 + $0x70] sm:$0xff] %vm232_vm0, %v1464_v55  ;;  %v2076_v19 = vpop.eup %2075  ;;  %v1467_v2 = vmul.f32 %v2074_v57, %v2654_v26  ;;  %1497 = vst.msk [vmem:[%s2892_s29 + $0x78] sm:$0xff] %vm232_vm0, %v1465_v18 }
 0x1cc   : > { %2095 = vtanh.f32 %v1414_v14  ;;  %v2078_v63 = vpop.eup %2077  ;;  %v1468_v22 = vmul.f32 %v2076_v19, %v2656_v27  ;;  %1498 = vst.msk [vmem:[%s2892_s29 + $0x80] sm:$0xff] %vm232_vm0, %v1466_v8 }
 0x1cd   : > { %2097 = vtanh.f32 %v1415_v43  ;;  %v2080_v24 = vpop.eup %2079  ;;  %v1469_v23 = vmul.f32 %v2078_v63, %v2658_v30  ;;  %1499 = vst.msk [vmem:[%s2892_s29 + $0x88] sm:$0xff] %vm232_vm0, %v1467_v2 }
 0x1ce   : > { %2099 = vtanh.f32 %v1416_v58  ;;  %v2082_v28 = vpop.eup %2081  ;;  %v1470_v26 = vmul.f32 %v2080_v24, %v2660_v31  ;;  %1500 = vst.msk [vmem:[%s2892_s29 + $0x90] sm:$0xff] %vm232_vm0, %v1468_v22 }
 0x1cf   : > { %2101 = vtanh.f32 %v1417_v16  ;;  %v2084_v45 = vpop.eup %2083  ;;  %v1471_v27 = vmul.f32 %v2082_v28, %v2662_v34  ;;  %1501 = vst.msk [vmem:[%s2892_s29 + $0x98] sm:$0xff] %vm232_vm0, %v1469_v23 }
 0x1d0   : > { %v2086_v46 = vpop.eup %2085  ;;  %v1472_v40 = vmul.f32 %v2084_v45, %v2664_v35  ;;  %1502 = vst.msk [vmem:[%s2892_s29 + $0xa0] sm:$0xff] %vm232_vm0, %v1470_v26 }
 0x1d1   : > { %v2088_v30 = vpop.eup %2087  ;;  %v1473_v31 = vmul.f32 %v2086_v46, %v2666_v38  ;;  %1503 = vst.msk [vmem:[%s2892_s29 + $0xa8] sm:$0xff] %vm232_vm0, %v1471_v27 }
 0x1d2   : > { %v1474_v34 = vmul.f32 %v2088_v30, %v2668_v39  ;;  %1504 = vst.msk [vmem:[%s2892_s29 + $0xb0] sm:$0xff] %vm232_vm0, %v1472_v40 }
 0x1d3   : > { %v2090_v5 = vpop.eup %2089  ;;  %1505 = vst.msk [vmem:[%s2892_s29 + $0xb8] sm:$0xff] %vm232_vm0, %v1473_v31 }
 0x1d4   : > { %v2092_v51 = vpop.eup %2091  ;;  %v1475_v35 = vmul.f32 %v2090_v5, %v2670_v42  ;;  %1506 = vst.msk [vmem:[%s2892_s29 + $0xc0] sm:$0xff] %vm232_vm0, %v1474_v34 }
 0x1d5   : > { %v2094_v60 = vpop.eup %2093  ;;  %v1476_v54 = vmul.f32 %v2092_v51, %v3109_v62 }
 0x1d6   : > { %v2096_v38 = vpop.eup %2095  ;;  %v1477_v47 = vmul.f32 %v2094_v60, %v3111_v37  ;;  %1507 = vst.msk [vmem:[%s2892_s29 + $0xc8] sm:$0xff] %vm232_vm0, %v1475_v35 }
 0x1d7   : > { %v2098_v39 = vpop.eup %2097  ;;  %v1478_v42 = vmul.f32 %v2096_v38, %v3113_v56  ;;  %1508 = vst.msk [vmem:[%s2892_s29 + $0xd0] sm:$0xff] %vm232_vm0, %v1476_v54 }
 0x1d8   : > { %v2100_v62 = vpop.eup %2099  ;;  %v1479_v59 = vmul.f32 %v2098_v39, %v3115_v33  ;;  %1509 = vst.msk [vmem:[%s2892_s29 + $0xd8] sm:$0xff] %vm232_vm0, %v1477_v47 }
 0x1d9   : > { %v2102_v37 = vpop.eup %2101  ;;  %v1480_v6 = vmul.f32 %v2100_v62, %v3131_v41  ;;  %1510 = vst.msk [vmem:[%s2892_s29 + $0xe0] sm:$0xff] %vm232_vm0, %v1478_v42 }
 0x1da   : > { %v1481_v56 = vmul.f32 %v2102_v37, %v3132_v17  ;;  %1511 = vst.msk [vmem:[%s2892_s29 + $0xe8] sm:$0xff] %vm232_vm0, %v1479_v59 }
 0x1db   : > { %1512 = vst.msk [vmem:[%s2892_s29 + $0xf0] sm:$0xff] %vm232_vm0, %v1480_v6 }
 0x1dc   : > { %1513 = vst.msk [vmem:[%s2892_s29 + $0xf8] sm:$0xff] %vm232_vm0, %v1481_v56 }
 0x1dd   : > { %2116 = shalt.err (!%p2113_p3)
}
 0x1de   : > { %s2117_s13 = scalar_lea.hbm %s3021_s7, 4096  ;;  %s2121_s22 = scalar_lea.hbm %s3079_s4, 8192 }
 0x1df   : > { %p2118_p4 = scmp.ne.s32.totalorder %s3021_s7, %s2117_s13  ;;  %p2122_p9 = scmp.lt.u32.totalorder %s3021_s7, %s3079_s4 }
 0x1e0   : > { %p2123_p10 = scmp.lt.u32.totalorder %s2121_s22, %s2117_s13  ;;  %p2125_p12 = scmp.lt.u32.totalorder %s2117_s13, %s3021_s7 }
 0x1e1   : > { %p2119_p7 = pnand %p2118_p4, %p2233_p5 }
 0x1e2   : > { %p2124_p11 = por %p2123_p10, %p2122_p9 }
 0x1e3   : > { %p2120_p8 = pneg %p2119_p7 }
 0x1e4   : > { %p2126_p13 = por %p2125_p12, %p2124_p11 }
 0x1e6   : > { %p2127_p0 = pnand %p2126_p13, %p2120_p8 }
 0x1e8   : > { %2130 = shalt.err (!%p2127_p0)
}
 0x1e9   : > { %s2168_s28 = smov 128   ;;  %s2169_s29 = smov 8  }
 0x1ea   : > { %1868 = dma.vmem_to_hbm [thread:$0]  (%p2233_p5), %s3023_s5, 4096, %s3021_s7, %s3034_s8, %s2168_s28, %s2168_s28, %s2169_s29  }
 0x1eb PF: > { %p1874_p1 = scmp.ge.s32.totalorder %s2165_s18, 2  ;;  %s1543_s30 = sand.u32 1, %s2153_s15  }
 0x1ec   : > { %s1544_s19 = scalar_lea.sflag [#allocation3], %s1543_s30 }
 0x1ed   : > { %p1871_p2 = pnand %p1874_p1, %p2237_p6 }
 0x1ef   : > { %2148 = dma.done.wait (!%p1871_p2), %s1544_s19, 4096  }
 0x1f0   : > { %2150 = vsyncadd (!%p1871_p2), %s1544_s19, 4294963200  ;;  %p14_p3 = scmp.ge.s32.totalorder %s2220_s21, 4   ;;  %s3134_s15 = smov %s2157_s16 }
 0x1f1   : > { %s3135_s16 = smov %s2161_s17  ;;  %s3136_s17 = smov %s2231_s24 }
 0x1f2   : > { %s3137_s18 = smov %s2220_s21  ;;  %16 = sbr.rel (!%p14_p3) target bundleno = 3 (0x3), region = 71 }
 0x1f9   :  { %1549 = vsyncpa [#allocation3], 1 }
 0x1fa   :  { %1551 = vsyncpa [#allocation3 + $0x1], 1 }

</bundles_post_ra>
